<compile_context>
chip_gen: v7x
topology: tpu7x:2x2x1
jax: 0.10.0
libtpu: 0.0.40
codegen_flags: <defaults>
</compile_context>

<pallas_src>
import functools
import math

import jax
import jax.numpy as jnp
import numpy as np
from jax import lax
from jax.experimental import pallas as pl
from jax.experimental.pallas import tpu as pltpu

# Model hyper-parameters (the `para` dict of the PyTorch module), kept small.
WINDOW = 4        # para['window']
ENCO_LEN = 12     # args['enLen']
EXT_IN = 5        # 1 (blended zone temp) + 4 external features
EXT_H = 32        # LSTM hidden size
EXT_OUT = 1
INT_IN = 3
INT_H = 16
INT_OUT = 1


def _cdiv(a, b):
    return -(-a // b)


def _round_up(a, b):
    return _cdiv(a, b) * b


def _sigmoid(v):
    # tanh-based sigmoid -> EUP slot instead of a VALU divide.
    return 0.5 * jnp.tanh(0.5 * v) + 0.5


# ----------------------------------------------------------------------------
# Standalone Pallas kernel for the `internal` module (the spec):
#   relu(FC1(x)) -> sigmoid(FC3(.)) -> scale(.)      (FC2 is unused in forward)
# ----------------------------------------------------------------------------
def _internal_kernel(x_ref, w1_ref, b1_ref, w3_ref, b3_ref, scale_ref, o_ref):
    a = jnp.maximum(jnp.dot(x_ref[...], w1_ref[...],
                            preferred_element_type=jnp.float32) + b1_ref[...],
                    0.0)
    # N=1 output column -> VPU broadcast-multiply + lane reduction, not MXU.
    z = jnp.sum(a * w3_ref[...], axis=-1, keepdims=True) + b3_ref[...]
    o_ref[...] = _sigmoid(z) * scale_ref[...]


def internal_forward(x, p):
    """internal.forward(x): x [N, INT_IN] -> [N, INT_OUT]."""
    N = x.shape[0]
    return pl.pallas_call(
        _internal_kernel,
        out_shape=jax.ShapeDtypeStruct((N, 1), jnp.float32),
    )(x.astype(jnp.float32), p['i1w_t'], p['i1b'],
      p['i3w_t'].reshape(1, -1), p['i3b'], p['scale'])


# ----------------------------------------------------------------------------
# Pallas kernel: one batch tile's full sequential time-stepper per grid step.
#   x slab  : [T*BT, 8]  rows = (t*BT + local_b), lanes = 7 features + pad
#   out slab: [T*BT, 4]  channels: 0=T_out, 1=ext_flux, 2=hvac, 3=int_flux
# ----------------------------------------------------------------------------
def _modnn_kernel(window, enco_len, T, BT,
                  x_ref,
                  wih_ref, whh_ref, b_ref,
                  fc1w_ref, fc1b_ref, fc2w_ref,
                  i1w_ref, i1b_ref, i3w_ref,
                  fc2b_ref, i3b_ref, scale_ref, zone_ref,   # SMEM scalars
                  out_ref,
                  efp_ref):
    H = whh_ref.shape[0]
    GH = 4 * H

    # lane scale: 0.5 on the i/f/o (sigmoid) gate blocks, 1.0 on the g (tanh)
    # block.  Folding it into every gate pre-activation term lets ONE full-lane
    # tanh + one full-lane mul-add replace four quarter-vreg sigmoids.
    col = lax.broadcasted_iota(jnp.int32, (1, GH), 1)
    lane_scale = jnp.where((col >= 2 * H) & (col < 3 * H),
                           jnp.float32(1.0), jnp.float32(0.5))

    # ---- hoist 1: LSTM input projection (+ bias), one bulk matmul ----------
    efp_ref[...] = (jnp.dot(x_ref[:, 1:5], wih_ref[1:5, :],
                            preferred_element_type=jnp.float32)
                    + b_ref[...]) * lane_scale

    # ---- hoist 2: internal heat-gain MLP + hvac (input-only work) ----------
    scale_s = scale_ref[0, 0]
    i3b_s = i3b_ref[0, 0]
    ai = jnp.maximum(jnp.dot(x_ref[:, 3:6], i1w_ref[...],
                             preferred_element_type=jnp.float32)
                     + i1b_ref[...], 0.0)                      # [T*BT, IH]
    int_all = _sigmoid(jnp.sum(ai * i3w_ref[...], axis=-1, keepdims=True)
                       + i3b_s) * scale_s                      # [T*BT, 1]
    row = lax.broadcasted_iota(jnp.int32, (T * BT, 1), 0)
    int_all = jnp.where(row >= window * BT, int_all, 0.0)

    # bulk output init: ch0 = measured T (warm-up; overwritten for t>=window),
    # ch1 = ext flux (0 until written per step), ch2 = hvac, ch3 = int flux.
    out_ref[...] = jnp.concatenate(
        [x_ref[:, 0:1],
         jnp.zeros((T * BT, 1), jnp.float32),
         x_ref[:, 6:7],
         int_all], axis=1)

    if T <= window:          # whole sequence is warm-up: no recurrence, no OOB
        return

    # ---- loop-invariant operands, loaded & pre-scaled once ------------------
    w_t0 = wih_ref[0:1, :] * lane_scale                        # [1, 4H]
    whh = whh_ref[...] * lane_scale                            # [H, 4H]
    fc1w = fc1w_ref[...]
    fc1b = fc1b_ref[...]
    fc2w = fc2w_ref[...]                                       # [1, H]
    fc2b_s = fc2b_ref[0, 0]
    zone_s = zone_ref[0, 0]

    def outer_step(i, carry, is_enc):
        h, c, ez, hist = carry
        row_i = pl.ds(pl.multiple_of(i * BT, BT), BT)
        out_ref[row_i, 0:1] = ez                               # T_out[i] = e_zone

        if is_enc:
            ratio = i.astype(jnp.float32) / float(enco_len)
        x_meas_i = None

        # zone-temp history for the lookback window lives in the carry.
        tout_win = hist + (ez,)
        for jj in range(window):                               # short, static
            j = i - (window - 1) + jj
            row_j = pl.ds(pl.multiple_of(j * BT, BT), BT)
            tout_j = tout_win[jj]
            if is_enc:
                x_meas = x_ref[row_j, 0:1]
                t0 = x_meas * ratio + tout_j * (1.0 - ratio)
                if jj == window - 1:
                    x_meas_i = x_meas
            else:
                t0 = tout_j
            gates = (t0 * w_t0 + efp_ref[row_j, :]
                     + jnp.dot(h, whh, preferred_element_type=jnp.float32))
            act = jnp.tanh(gates)                              # one full-lane EUP op
            sig = 0.5 * act + 0.5
            ig = sig[:, 0:H]
            fg = sig[:, H:2 * H]
            gg = act[:, 2 * H:3 * H]
            og = sig[:, 3 * H:4 * H]
            c = fg * c + ig * gg
            h = og * jnp.tanh(c)

        # external head: FC1 -> ReLU -> (VPU reduce instead of N=1 MXU matmul)
        a = jnp.maximum(
            jnp.dot(h, fc1w, preferred_element_type=jnp.float32) + fc1b, 0.0)
        ext_flux = jnp.sum(a * fc2w, axis=-1, keepdims=True) + fc2b_s
        out_ref[row_i, 1:2] = ext_flux

        # hvac + int flux were hoisted; read them back off the critical path.
        hv_int = jnp.sum(out_ref[row_i, 2:4], axis=-1, keepdims=True)
        total = ext_flux + hv_int

        if is_enc:
            ez_new = ratio * x_meas_i + (1.0 - ratio) * ez + total * zone_s
        else:
            ez_new = total * zone_s + ez
        return h, c, ez_new, tout_win[1:]

    hist0 = tuple(x_ref[k * BT:(k + 1) * BT, 0:1] for k in range(1, window))
    ez0 = x_ref[window * BT:(window + 1) * BT, 0:1]
    carry = (jnp.ones((BT, H), jnp.float32),                   # h_ext
             jnp.ones((BT, H), jnp.float32),                   # c_ext
             ez0, hist0)

    enc_stop = max(window, min(enco_len, T))
    carry = lax.fori_loop(window, enc_stop,
                          lambda i, cr: outer_step(i, cr, True), carry)
    lax.fori_loop(enc_stop, T,
                  lambda i, cr: outer_step(i, cr, False), carry)


# ----------------------------------------------------------------------------
# Wrapper: VMEM-budgeted batch tiling, fused slabs, pallas_call, unpack
# ----------------------------------------------------------------------------
def modnn_forward(x, p, *, window=WINDOW, enco_len=ENCO_LEN, min_grid=1):
    # min_grid=2 is the recommended setting on v7x (two TensorCores per chip);
    # single-TC parts (v5e/v6e) want the default min_grid=1 (grid collapses).
    B, T, F = x.shape
    assert F == 7
    H = p['whh_t'].shape[0]

    # --- VMEM-budgeted batch-tile sizing -------------------------------------
    Bp8 = _round_up(B, 8)
    # per-unit-of-BT f32 bytes: lane-padded (->128) x / out slabs, each
    # double-buffered, + efp scratch.  Weights are negligible.
    bytes_per_bt = 4 * T * (2 * 128 + 2 * 128 + 4 * H)
    bt_cap = max(8, min(512, ((40 << 20) // bytes_per_bt) // 8 * 8))
    G = max(_cdiv(Bp8, bt_cap), min(min_grid, Bp8 // 8), 1)
    BT = _round_up(_cdiv(Bp8, G), 8)
    Bp = G * BT
    vmem_limit = int(min(max(2 * bytes_per_bt * BT + (4 << 20), 32 << 20),
                         64 << 20))

    # fused, padded input slab: [G, T*BT, 8]; row (t*BT + local_b), lane = feat
    xp = jnp.pad(x.astype(jnp.float32), ((0, Bp - B), (0, 0), (0, 1)))
    xg = xp.reshape(G, BT, T, 8).transpose(0, 2, 1, 3).reshape(G, T * BT, 8)

    vparams = (p['wih_t'], p['whh_t'], p['b'],
               p['fc1w_t'], p['fc1b'], p['fc2w_t'].reshape(1, -1),
               p['i1w_t'], p['i1b'], p['i3w_t'].reshape(1, -1))
    sparams = (p['fc2b'], p['i3b'], p['scale'], p['zone'])     # [1,1] scalars

    x_spec = pl.BlockSpec((None, T * BT, 8), lambda g: (g, 0, 0))
    out_spec = pl.BlockSpec((None, T * BT, 4), lambda g: (g, 0, 0))
    in_specs = ([x_spec]
                + [pl.BlockSpec(a.shape, lambda g: (0, 0)) for a in vparams]
                + [pl.BlockSpec(memory_space=pltpu.MemorySpace.SMEM)
                   for _ in sparams])

    n_dec = max(T - window, 0)
    IH = p['i1w_t'].shape[1]
    cost = pl.CostEstimate(
        flops=int(G * (2 * T * BT * (4 * 4 * H + 3 * IH)
                       + n_dec * (window * 2 * BT * H * 4 * H
                                  + 2 * BT * H * H))),
        transcendentals=int(G * (T * BT + n_dec * window * BT * 5 * H)),
        bytes_accessed=int(4 * (xg.size + G * T * BT * 4
                                + sum(int(np.prod(v.shape))
                                      for v in p.values()))),
    )

    out = pl.pallas_call(
        functools.partial(_modnn_kernel, window, enco_len, T, BT),
        grid=(G,),
        out_shape=jax.ShapeDtypeStruct((G, T * BT, 4), jnp.float32),
        in_specs=in_specs,
        out_specs=out_spec,
        scratch_shapes=[pltpu.VMEM((T * BT, 4 * H), jnp.float32)],
        compiler_params=pltpu.CompilerParams(
            dimension_semantics=("parallel",),
            vmem_limit_bytes=vmem_limit),
        cost_estimate=cost,
    )(xg, *vparams, *sparams)

    out = out.reshape(G, T, BT, 4).transpose(0, 2, 1, 3).reshape(Bp, T, 4)[:B]
    tout = out[:, :, 0:1]
    ext_l = out[:, :, 1:2]
    hvac = out[:, :, 2:3]
    int_l = out[:, :, 3:4]
    return tout, hvac, (ext_l, int_l)


# ----------------------------------------------------------------------------
# Deterministic parameter init (PyTorch-default-style uniform bounds)
# ----------------------------------------------------------------------------
def init_params(key):
    ks = jax.random.split(key, 14)

    def u(k, shape, fan_in):
        bound = 1.0 / math.sqrt(fan_in)
        return jax.random.uniform(k, shape, jnp.float32, -bound, bound)

    H, IH = EXT_H, INT_H
    w_ih = u(ks[0], (4 * H, EXT_IN), H)
    w_hh = u(ks[1], (4 * H, H), H)
    b_ih = u(ks[2], (4 * H,), H)
    b_hh = u(ks[3], (4 * H,), H)
    fc1_w = u(ks[4], (H, H), H)
    fc1_b = u(ks[5], (H,), H)
    fc2_w = u(ks[6], (EXT_OUT, H), H)
    fc2_b = u(ks[7], (EXT_OUT,), H)
    i1_w = u(ks[8], (IH, INT_IN), INT_IN)
    i1_b = u(ks[9], (IH,), INT_IN)
    i3_w = u(ks[10], (INT_OUT, IH), IH)
    i3_b = u(ks[11], (INT_OUT,), IH)
    scale_w = u(ks[12], (INT_OUT, INT_OUT), INT_OUT)
    zone_w = u(ks[13], (1, 1), 1)

    # NOTE: b is the PRE-SUMMED b_ih + b_hh (a single LSTM bias ref).
    return dict(
        wih_t=w_ih.T, whh_t=w_hh.T, b=(b_ih + b_hh).reshape(1, -1),
        fc1w_t=fc1_w.T, fc1b=fc1_b.reshape(1, -1),
        fc2w_t=fc2_w.T, fc2b=fc2_b.reshape(1, -1),
        i1w_t=i1_w.T, i1b=i1_b.reshape(1, -1),
        i3w_t=i3_w.T, i3b=i3_b.reshape(1, -1),
        scale=scale_w, zone=zone_w)


# ----------------------------------------------------------------------------
# Pure-JAX reference (direct translation of the PyTorch forward)
# ----------------------------------------------------------------------------
def modnn_ref(x, p, *, window=WINDOW, enco_len=ENCO_LEN):
    B, T, _ = x.shape
    H = p['whh_t'].shape[0]
    wih, whh, b = p['wih_t'], p['whh_t'], p['b']

    def lstm_step(e, h, c):
        g = e @ wih + h @ whh + b
        ig, fg = _sigmoid(g[:, :H]), _sigmoid(g[:, H:2 * H])
        gg, og = jnp.tanh(g[:, 2 * H:3 * H]), _sigmoid(g[:, 3 * H:])
        c = fg * c + ig * gg
        return og * jnp.tanh(c), c

    def ext_mod(seq, h, c):
        for t in range(seq.shape[1]):
            h, c = lstm_step(seq[:, t, :], h, c)
        a = jnp.maximum(h @ p['fc1w_t'] + p['fc1b'], 0.0)
        return a @ p['fc2w_t'] + p['fc2b'], h, c

    def int_mod(xi):
        a = jnp.maximum(xi @ p['i1w_t'] + p['i1b'], 0.0)
        return _sigmoid(a @ p['i3w_t'] + p['i3b']) * p['scale']

    tout = jnp.zeros((B, T), jnp.float32)
    hvl = jnp.zeros((B, T), jnp.float32)
    exl = jnp.zeros((B, T), jnp.float32)
    inl = jnp.zeros((B, T), jnp.float32)
    h = jnp.ones((B, H), jnp.float32)
    c = jnp.ones((B, H), jnp.float32)

    for i in range(min(window, T)):
        tout = tout.at[:, i].set(x[:, i, 0])
        hvl = hvl.at[:, i].set(x[:, i, 6])

    if T <= window:
        return (tout[:, :, None], hvl[:, :, None],
                (exl[:, :, None], inl[:, :, None]))

    e_zone = x[:, window, 0:1]
    for i in range(window, T):
        ratio = float(i) / float(enco_len)
        tout = tout.at[:, i].set(e_zone[:, 0])
        lo = i - window + 1
        if i < enco_len:
            t0 = x[:, lo:i + 1, 0:1] * ratio + tout[:, lo:i + 1, None] * (1 - ratio)
        else:
            t0 = tout[:, lo:i + 1, None]
        seq = jnp.concatenate([t0, x[:, lo:i + 1, 1:5]], axis=2)
        ext_flux, h, c = ext_mod(seq, h, c)
        hvac_flux = x[:, i, 6:7]
        int_flux = int_mod(x[:, i, 3:6])
        total = ext_flux + hvac_flux + int_flux
        hvl = hvl.at[:, i].set(hvac_flux[:, 0])
        exl = exl.at[:, i].set(ext_flux[:, 0])
        inl = inl.at[:, i].set(int_flux[:, 0])
        if i < enco_len:
            e_zone = ratio * x[:, i, 0:1] + (1 - ratio) * e_zone + total * p['zone']
        else:
            e_zone = total * p['zone'] + e_zone

    return (tout[:, :, None], hvl[:, :, None],
            (exl[:, :, None], inl[:, :, None]))


if __name__ == "__main__":
    key = jax.random.PRNGKey(0)
    kx, kp, ki = jax.random.split(key, 3)

    B, T = 2, 16
    x = jax.random.normal(kx, (B, T, 7), jnp.float32)
    params = init_params(kp)

    # Full ModNN time-stepper (contains the `internal` MLP) as one Pallas kernel.
    out = jax.jit(modnn_forward)(x, params)
    out = jax.block_until_ready(out)
    tout, hvac, (ext_l, int_l) = out

    rt, rh, (re, ri) = modnn_ref(x, params)
    for a, r in ((tout, rt), (hvac, rh), (ext_l, re), (int_l, ri)):
        assert a.shape == (B, T, 1)
        np.testing.assert_allclose(np.asarray(a), np.asarray(r),
                                   rtol=1e-2, atol=1e-2)

    # Standalone `internal` module (the spec) as its own Pallas kernel.
    xi = jax.random.normal(ki, (32, 3), jnp.float32)
    yi = jax.block_until_ready(jax.jit(internal_forward)(xi, params))
    a_i = jnp.maximum(xi @ params['i1w_t'] + params['i1b'], 0.0)
    ref_i = _sigmoid(a_i @ params['i3w_t'] + params['i3b']) * params['scale']
    np.testing.assert_allclose(np.asarray(yi), np.asarray(ref_i),
                               rtol=1e-3, atol=1e-3)

    print("KERNEL_OK")
</pallas_src>

<mosaic_0001>
module attributes {stable_mosaic.version = 11 : i64} {
  func.func @_modnn_kernel(%arg0: i32, %arg1: memref<1x128x8xf32, #tpu.memory_space<vmem>>, %arg2: memref<5x128xf32, #tpu.memory_space<vmem>>, %arg3: memref<32x128xf32, #tpu.memory_space<vmem>>, %arg4: memref<1x128xf32, #tpu.memory_space<vmem>>, %arg5: memref<32x32xf32, #tpu.memory_space<vmem>>, %arg6: memref<1x32xf32, #tpu.memory_space<vmem>>, %arg7: memref<1x32xf32, #tpu.memory_space<vmem>>, %arg8: memref<3x16xf32, #tpu.memory_space<vmem>>, %arg9: memref<1x16xf32, #tpu.memory_space<vmem>>, %arg10: memref<1x16xf32, #tpu.memory_space<vmem>>, %arg11: memref<1x1xf32, #tpu.memory_space<smem>>, %arg12: memref<1x1xf32, #tpu.memory_space<smem>>, %arg13: memref<1x1xf32, #tpu.memory_space<smem>>, %arg14: memref<1x1xf32, #tpu.memory_space<smem>>, %arg15: memref<1x128x4xf32, #tpu.memory_space<vmem>>, %arg16: memref<128x128xf32, #tpu.memory_space<vmem>>) attributes {dimension_semantics = [#tpu.dimension_semantics<parallel>], iteration_bounds = array<i64: 1>, scalar_prefetch = 0 : i64, scratch_operands = 1 : i64, tpu.core_type = #tpu.core_type<tc>, window_params = [{transform_indices = @transform_0, window_bounds = array<i64: 1, 128, 8>}, {pipeline_mode = #tpu.pipeline_mode<synchronous>, transform_indices = @transform_1, window_bounds = array<i64: 5, 128>}, {pipeline_mode = #tpu.pipeline_mode<synchronous>, transform_indices = @transform_2, window_bounds = array<i64: 32, 128>}, {pipeline_mode = #tpu.pipeline_mode<synchronous>, transform_indices = @transform_3, window_bounds = array<i64: 1, 128>}, {pipeline_mode = #tpu.pipeline_mode<synchronous>, transform_indices = @transform_4, window_bounds = array<i64: 32, 32>}, {pipeline_mode = #tpu.pipeline_mode<synchronous>, transform_indices = @transform_5, window_bounds = array<i64: 1, 32>}, {pipeline_mode = #tpu.pipeline_mode<synchronous>, transform_indices = @transform_6, window_bounds = array<i64: 1, 32>}, {pipeline_mode = #tpu.pipeline_mode<synchronous>, transform_indices = @transform_7, window_bounds = array<i64: 3, 16>}, {pipeline_mode = #tpu.pipeline_mode<synchronous>, transform_indices = @transform_8, window_bounds = array<i64: 1, 16>}, {pipeline_mode = #tpu.pipeline_mode<synchronous>, transform_indices = @transform_9, window_bounds = array<i64: 1, 16>}, {transform_indices = @transform_10, window_bounds = array<i64: 1, 1>}, {transform_indices = @transform_11, window_bounds = array<i64: 1, 1>}, {transform_indices = @transform_12, window_bounds = array<i64: 1, 1>}, {transform_indices = @transform_13, window_bounds = array<i64: 1, 1>}, {transform_indices = @transform_14, window_bounds = array<i64: 1, 128, 4>}]} {
    %0 = tpu.iota {dimensions = array<i32: 1>} : vector<1x128xi32>
    %c64_i32 = arith.constant 64 : i32
    %1 = vector.broadcast %c64_i32 : i32 to vector<1x128xi32>
    %2 = arith.cmpi sge, %0, %1 : vector<1x128xi32>
    %c96_i32 = arith.constant 96 : i32
    %3 = vector.broadcast %c96_i32 : i32 to vector<1x128xi32>
    %4 = arith.cmpi slt, %0, %3 : vector<1x128xi32>
    %5 = arith.andi %2, %4 : vector<1x128xi1>
    %cst = arith.constant 1.000000e+00 : f32
    %cst_0 = arith.constant 5.000000e-01 : f32
    %6 = vector.broadcast %cst : f32 to vector<1x128xf32>
    %7 = vector.broadcast %cst_0 : f32 to vector<1x128xf32>
    %8 = arith.select %5, %6, %7 : vector<1x128xi1>, vector<1x128xf32>
    %c0 = arith.constant 0 : index
    %c0_1 = arith.constant 0 : index
    %c1 = arith.constant 1 : index
    %9 = vector.load %arg1[%c0, %c0_1, %c1] : memref<1x128x8xf32, #tpu.memory_space<vmem>>, vector<1x128x4xf32>
    %10 = vector.shape_cast %9 : vector<1x128x4xf32> to vector<128x4xf32>
    %c1_2 = arith.constant 1 : index
    %c0_3 = arith.constant 0 : index
    %11 = vector.load %arg2[%c1_2, %c0_3] : memref<5x128xf32, #tpu.memory_space<vmem>>, vector<4x128xf32>
    %cst_4 = arith.constant dense<0.000000e+00> : vector<128x128xf32>
    %12 = tpu.matmul %10, %11, %cst_4 {dimension_numbers = #tpu.dot_dimension_numbers<[1], [0], [0], [1], [0, 0, 1, 1], [], []>} : vector<128x4xf32>, vector<4x128xf32>, vector<128x128xf32> -> vector<128x128xf32>
    %c0_5 = arith.constant 0 : index
    %c0_6 = arith.constant 0 : index
    %13 = vector.load %arg4[%c0_5, %c0_6] : memref<1x128xf32, #tpu.memory_space<vmem>>, vector<1x128xf32>
    %14 = vector.broadcast %13 : vector<1x128xf32> to vector<128x128xf32>
    %15 = arith.addf %12, %14 : vector<128x128xf32>
    %16 = vector.broadcast %8 : vector<1x128xf32> to vector<128x128xf32>
    %17 = arith.mulf %15, %16 : vector<128x128xf32>
    %c0_7 = arith.constant 0 : index
    %c0_8 = arith.constant 0 : index
    %18 = vector.load %arg16[%c0_7, %c0_8] : memref<128x128xf32, #tpu.memory_space<vmem>>, vector<128x128xf32>
    tpu.vector_store %arg16[%c0_7, %c0_8], %17 {strides = array<i32>} : memref<128x128xf32, #tpu.memory_space<vmem>>, vector<128x128xf32>,
    %c0_9 = arith.constant 0 : index
    %c0_10 = arith.constant 0 : index
    %19 = memref.load %arg13[%c0_9, %c0_10] : memref<1x1xf32, #tpu.memory_space<smem>>
    %c0_11 = arith.constant 0 : index
    %c0_12 = arith.constant 0 : index
    %20 = memref.load %arg12[%c0_11, %c0_12] : memref<1x1xf32, #tpu.memory_space<smem>>
    %c0_13 = arith.constant 0 : index
    %c0_14 = arith.constant 0 : index
    %c3 = arith.constant 3 : index
    %21 = vector.load %arg1[%c0_13, %c0_14, %c3] : memref<1x128x8xf32, #tpu.memory_space<vmem>>, vector<1x128x3xf32>
    %22 = vector.shape_cast %21 : vector<1x128x3xf32> to vector<128x3xf32>
    %c0_15 = arith.constant 0 : index
    %c0_16 = arith.constant 0 : index
    %23 = vector.load %arg8[%c0_15, %c0_16] : memref<3x16xf32, #tpu.memory_space<vmem>>, vector<3x16xf32>
    %cst_17 = arith.constant dense<0.000000e+00> : vector<128x16xf32>
    %24 = tpu.matmul %22, %23, %cst_17 {dimension_numbers = #tpu.dot_dimension_numbers<[1], [0], [0], [1], [0, 0, 1, 1], [], []>} : vector<128x3xf32>, vector<3x16xf32>, vector<128x16xf32> -> vector<128x16xf32>
    %c0_18 = arith.constant 0 : index
    %c0_19 = arith.constant 0 : index
    %25 = vector.load %arg9[%c0_18, %c0_19] : memref<1x16xf32, #tpu.memory_space<vmem>>, vector<1x16xf32>
    %26 = vector.broadcast %25 : vector<1x16xf32> to vector<128x16xf32>
    %27 = arith.addf %24, %26 : vector<128x16xf32>
    %cst_20 = arith.constant 0.000000e+00 : f32
    %28 = vector.broadcast %cst_20 : f32 to vector<128x16xf32>
    %29 = arith.maximumf %27, %28 : vector<128x16xf32>
    %c0_21 = arith.constant 0 : index
    %c0_22 = arith.constant 0 : index
    %30 = vector.load %arg10[%c0_21, %c0_22] : memref<1x16xf32, #tpu.memory_space<vmem>>, vector<1x16xf32>
    %31 = vector.broadcast %30 : vector<1x16xf32> to vector<128x16xf32>
    %32 = arith.mulf %29, %31 : vector<128x16xf32>
    %cst_23 = arith.constant dense<0.000000e+00> : vector<128xf32>
    %33 = vector.multi_reduction <add>, %32, %cst_23 [1] : vector<128x16xf32> to vector<128xf32>
    %34 = vector.shape_cast %33 : vector<128xf32> to vector<128x1xf32>
    %35 = vector.broadcast %20 : f32 to vector<128x1xf32>
    %36 = arith.addf %34, %35 : vector<128x1xf32>
    %cst_24 = arith.constant 5.000000e-01 : f32
    %37 = vector.broadcast %cst_24 : f32 to vector<128x1xf32>
    %38 = arith.mulf %37, %36 : vector<128x1xf32>
    %39 = math.tanh %38 : vector<128x1xf32>
    %cst_25 = arith.constant 5.000000e-01 : f32
    %40 = vector.broadcast %cst_25 : f32 to vector<128x1xf32>
    %41 = arith.mulf %40, %39 : vector<128x1xf32>
    %cst_26 = arith.constant 5.000000e-01 : f32
    %42 = vector.broadcast %cst_26 : f32 to vector<128x1xf32>
    %43 = arith.addf %41, %42 : vector<128x1xf32>
    %44 = vector.broadcast %19 : f32 to vector<128x1xf32>
    %45 = arith.mulf %43, %44 : vector<128x1xf32>
    %46 = tpu.iota {dimensions = array<i32: 0>} : vector<128x1xi32>
    %c32_i32 = arith.constant 32 : i32
    %47 = vector.broadcast %c32_i32 : i32 to vector<128x1xi32>
    %48 = arith.cmpi sge, %46, %47 : vector<128x1xi32>
    %cst_27 = arith.constant 0.000000e+00 : f32
    %49 = vector.broadcast %cst_27 : f32 to vector<128x1xf32>
    %50 = arith.select %48, %45, %49 : vector<128x1xi1>, vector<128x1xf32>
    %c0_28 = arith.constant 0 : index
    %c0_29 = arith.constant 0 : index
    %c0_30 = arith.constant 0 : index
    %51 = vector.load %arg1[%c0_28, %c0_29, %c0_30] : memref<1x128x8xf32, #tpu.memory_space<vmem>>, vector<1x128x1xf32>
    %52 = vector.shape_cast %51 : vector<1x128x1xf32> to vector<128x1xf32>
    %cst_31 = arith.constant 0.000000e+00 : f32
    %53 = vector.broadcast %cst_31 : f32 to vector<128x1xf32>
    %c0_32 = arith.constant 0 : index
    %c0_33 = arith.constant 0 : index
    %c6 = arith.constant 6 : index
    %54 = vector.load %arg1[%c0_32, %c0_33, %c6] : memref<1x128x8xf32, #tpu.memory_space<vmem>>, vector<1x128x1xf32>
    %55 = vector.shape_cast %54 : vector<1x128x1xf32> to vector<128x1xf32>
    %56 = tpu.concatenate %52, %53, %55, %50 in 1 : vector<128x1xf32>, vector<128x1xf32>, vector<128x1xf32>, vector<128x1xf32> -> vector<128x4xf32>
    %c0_34 = arith.constant 0 : index
    %c0_35 = arith.constant 0 : index
    %c0_36 = arith.constant 0 : index
    %57 = vector.load %arg15[%c0_34, %c0_35, %c0_36] : memref<1x128x4xf32, #tpu.memory_space<vmem>>, vector<1x128x4xf32>
    %58 = vector.shape_cast %57 : vector<1x128x4xf32> to vector<128x4xf32>
    %59 = vector.shape_cast %56 : vector<128x4xf32> to vector<1x128x4xf32>
    tpu.vector_store %arg15[%c0_34, %c0_35, %c0_36], %59 {strides = array<i32>} : memref<1x128x4xf32, #tpu.memory_space<vmem>>, vector<1x128x4xf32>,
    %c0_37 = arith.constant 0 : index
    %c0_38 = arith.constant 0 : index
    %60 = vector.load %arg2[%c0_37, %c0_38] : memref<5x128xf32, #tpu.memory_space<vmem>>, vector<1x128xf32>
    %61 = arith.mulf %60, %8 : vector<1x128xf32>
    %c0_39 = arith.constant 0 : index
    %c0_40 = arith.constant 0 : index
    %62 = vector.load %arg3[%c0_39, %c0_40] : memref<32x128xf32, #tpu.memory_space<vmem>>, vector<32x128xf32>
    %63 = vector.broadcast %8 : vector<1x128xf32> to vector<32x128xf32>
    %64 = arith.mulf %62, %63 : vector<32x128xf32>
    %c0_41 = arith.constant 0 : index
    %c0_42 = arith.constant 0 : index
    %65 = vector.load %arg5[%c0_41, %c0_42] : memref<32x32xf32, #tpu.memory_space<vmem>>, vector<32x32xf32>
    %c0_43 = arith.constant 0 : index
    %c0_44 = arith.constant 0 : index
    %66 = vector.load %arg6[%c0_43, %c0_44] : memref<1x32xf32, #tpu.memory_space<vmem>>, vector<1x32xf32>
    %c0_45 = arith.constant 0 : index
    %c0_46 = arith.constant 0 : index
    %67 = vector.load %arg7[%c0_45, %c0_46] : memref<1x32xf32, #tpu.memory_space<vmem>>, vector<1x32xf32>
    %c0_47 = arith.constant 0 : index
    %c0_48 = arith.constant 0 : index
    %68 = memref.load %arg11[%c0_47, %c0_48] : memref<1x1xf32, #tpu.memory_space<smem>>
    %c0_49 = arith.constant 0 : index
    %c0_50 = arith.constant 0 : index
    %69 = memref.load %arg14[%c0_49, %c0_50] : memref<1x1xf32, #tpu.memory_space<smem>>
    %c0_51 = arith.constant 0 : index
    %c8 = arith.constant 8 : index
    %c0_52 = arith.constant 0 : index
    %70 = vector.load %arg1[%c0_51, %c8, %c0_52] : memref<1x128x8xf32, #tpu.memory_space<vmem>>, vector<1x8x1xf32>
    %71 = vector.shape_cast %70 : vector<1x8x1xf32> to vector<8x1xf32>
    %c0_53 = arith.constant 0 : index
    %c16 = arith.constant 16 : index
    %c0_54 = arith.constant 0 : index
    %72 = vector.load %arg1[%c0_53, %c16, %c0_54] : memref<1x128x8xf32, #tpu.memory_space<vmem>>, vector<1x8x1xf32>
    %73 = vector.shape_cast %72 : vector<1x8x1xf32> to vector<8x1xf32>
    %c0_55 = arith.constant 0 : index
    %c24 = arith.constant 24 : index
    %c0_56 = arith.constant 0 : index
    %74 = vector.load %arg1[%c0_55, %c24, %c0_56] : memref<1x128x8xf32, #tpu.memory_space<vmem>>, vector<1x8x1xf32>
    %75 = vector.shape_cast %74 : vector<1x8x1xf32> to vector<8x1xf32>
    %c0_57 = arith.constant 0 : index
    %c32 = arith.constant 32 : index
    %c0_58 = arith.constant 0 : index
    %76 = vector.load %arg1[%c0_57, %c32, %c0_58] : memref<1x128x8xf32, #tpu.memory_space<vmem>>, vector<1x8x1xf32>
    %77 = vector.shape_cast %76 : vector<1x8x1xf32> to vector<8x1xf32>
    %cst_59 = arith.constant 1.000000e+00 : f32
    %78 = vector.broadcast %cst_59 : f32 to vector<8x32xf32>
    %cst_60 = arith.constant 1.000000e+00 : f32
    %79 = vector.broadcast %cst_60 : f32 to vector<8x32xf32>
    %c4_i32 = arith.constant 4 : i32
    %c8_i32 = arith.constant 8 : i32
    %80 = arith.addi %c4_i32, %c8_i32 : i32
    %c1_i32 = arith.constant 1 : i32
    %81:6 = scf.for %arg17 = %c4_i32 to %80 step %c1_i32 iter_args(%arg18 = %78, %arg19 = %79, %arg20 = %77, %arg21 = %71, %arg22 = %73, %arg23 = %75) -> (vector<8x32xf32>, vector<8x32xf32>, vector<8x1xf32>, vector<8x1xf32>, vector<8x1xf32>, vector<8x1xf32>)  : i32 {
      %c8_i32_65 = arith.constant 8 : i32
      %84 = arith.muli %arg17, %c8_i32_65 : i32
      %85 = tpu.assume_multiple %84, 8 : i32
      %c0_66 = arith.constant 0 : index
      %86 = arith.index_cast %85 : i32 to index
      %c0_67 = arith.constant 0 : index
      %87 = vector.load %arg15[%c0_66, %86, %c0_67] : memref<1x128x4xf32, #tpu.memory_space<vmem>>, vector<1x8x1xf32>
      %88 = vector.shape_cast %87 : vector<1x8x1xf32> to vector<8x1xf32>
      %89 = vector.shape_cast %arg20 : vector<8x1xf32> to vector<1x8x1xf32>
      tpu.vector_store %arg15[%c0_66, %86, %c0_67], %89 {strides = array<i32>} : memref<1x128x4xf32, #tpu.memory_space<vmem>>, vector<1x8x1xf32>,
      %90 = arith.sitofp %arg17 : i32 to f32
      %cst_68 = arith.constant 1.200000e+01 : f32
      %91 = arith.divf %90, %cst_68 : f32
      %c3_i32 = arith.constant 3 : i32
      %92 = arith.subi %arg17, %c3_i32 : i32
      %c0_i32 = arith.constant 0 : i32
      %93 = arith.addi %92, %c0_i32 : i32
      %c8_i32_69 = arith.constant 8 : i32
      %94 = arith.muli %93, %c8_i32_69 : i32
      %95 = tpu.assume_multiple %94, 8 : i32
      %c0_70 = arith.constant 0 : index
      %96 = arith.index_cast %95 : i32 to index
      %c0_71 = arith.constant 0 : index
      %97 = vector.load %arg1[%c0_70, %96, %c0_71] : memref<1x128x8xf32, #tpu.memory_space<vmem>>, vector<1x8x1xf32>
      %98 = vector.shape_cast %97 : vector<1x8x1xf32> to vector<8x1xf32>
      %99 = vector.broadcast %91 : f32 to vector<8x1xf32>
      %100 = arith.mulf %98, %99 : vector<8x1xf32>
      %cst_72 = arith.constant 1.000000e+00 : f32
      %101 = arith.subf %cst_72, %91 : f32
      %102 = vector.broadcast %101 : f32 to vector<8x1xf32>
      %103 = arith.mulf %arg21, %102 : vector<8x1xf32>
      %104 = arith.addf %100, %103 : vector<8x1xf32>
      %105 = vector.broadcast %104 : vector<8x1xf32> to vector<8x128xf32>
      %106 = vector.broadcast %61 : vector<1x128xf32> to vector<8x128xf32>
      %107 = arith.mulf %105, %106 : vector<8x128xf32>
      %108 = arith.index_cast %95 : i32 to index
      %c0_73 = arith.constant 0 : index
      %109 = vector.load %arg16[%108, %c0_73] : memref<128x128xf32, #tpu.memory_space<vmem>>, vector<8x128xf32>
      %110 = arith.addf %107, %109 : vector<8x128xf32>
      %cst_74 = arith.constant dense<0.000000e+00> : vector<8x128xf32>
      %111 = tpu.matmul %arg18, %64, %cst_74 {dimension_numbers = #tpu.dot_dimension_numbers<[1], [0], [0], [1], [0, 0, 1, 1], [], []>} : vector<8x32xf32>, vector<32x128xf32>, vector<8x128xf32> -> vector<8x128xf32>
      %112 = arith.addf %110, %111 : vector<8x128xf32>
      %113 = math.tanh %112 : vector<8x128xf32>
      %cst_75 = arith.constant 5.000000e-01 : f32
      %114 = vector.broadcast %cst_75 : f32 to vector<8x128xf32>
      %115 = arith.mulf %114, %113 : vector<8x128xf32>
      %cst_76 = arith.constant 5.000000e-01 : f32
      %116 = vector.broadcast %cst_76 : f32 to vector<8x128xf32>
      %117 = arith.addf %115, %116 : vector<8x128xf32>
      %118 = vector.extract_strided_slice %117 {offsets = [0, 0], sizes = [8, 32], strides = [1, 1]} : vector<8x128xf32> to vector<8x32xf32>
      %119 = vector.extract_strided_slice %117 {offsets = [0, 32], sizes = [8, 32], strides = [1, 1]} : vector<8x128xf32> to vector<8x32xf32>
      %120 = vector.extract_strided_slice %113 {offsets = [0, 64], sizes = [8, 32], strides = [1, 1]} : vector<8x128xf32> to vector<8x32xf32>
      %121 = vector.extract_strided_slice %117 {offsets = [0, 96], sizes = [8, 32], strides = [1, 1]} : vector<8x128xf32> to vector<8x32xf32>
      %122 = arith.mulf %119, %arg19 : vector<8x32xf32>
      %123 = arith.mulf %118, %120 : vector<8x32xf32>
      %124 = arith.addf %122, %123 : vector<8x32xf32>
      %125 = math.tanh %124 : vector<8x32xf32>
      %126 = arith.mulf %121, %125 : vector<8x32xf32>
      %c3_i32_77 = arith.constant 3 : i32
      %127 = arith.subi %arg17, %c3_i32_77 : i32
      %c1_i32_78 = arith.constant 1 : i32
      %128 = arith.addi %127, %c1_i32_78 : i32
      %c8_i32_79 = arith.constant 8 : i32
      %129 = arith.muli %128, %c8_i32_79 : i32
      %130 = tpu.assume_multiple %129, 8 : i32
      %c0_80 = arith.constant 0 : index
      %131 = arith.index_cast %130 : i32 to index
      %c0_81 = arith.constant 0 : index
      %132 = vector.load %arg1[%c0_80, %131, %c0_81] : memref<1x128x8xf32, #tpu.memory_space<vmem>>, vector<1x8x1xf32>
      %133 = vector.shape_cast %132 : vector<1x8x1xf32> to vector<8x1xf32>
      %134 = vector.broadcast %91 : f32 to vector<8x1xf32>
      %135 = arith.mulf %133, %134 : vector<8x1xf32>
      %cst_82 = arith.constant 1.000000e+00 : f32
      %136 = arith.subf %cst_82, %91 : f32
      %137 = vector.broadcast %136 : f32 to vector<8x1xf32>
      %138 = arith.mulf %arg22, %137 : vector<8x1xf32>
      %139 = arith.addf %135, %138 : vector<8x1xf32>
      %140 = vector.broadcast %139 : vector<8x1xf32> to vector<8x128xf32>
      %141 = vector.broadcast %61 : vector<1x128xf32> to vector<8x128xf32>
      %142 = arith.mulf %140, %141 : vector<8x128xf32>
      %143 = arith.index_cast %130 : i32 to index
      %c0_83 = arith.constant 0 : index
      %144 = vector.load %arg16[%143, %c0_83] : memref<128x128xf32, #tpu.memory_space<vmem>>, vector<8x128xf32>
      %145 = arith.addf %142, %144 : vector<8x128xf32>
      %cst_84 = arith.constant dense<0.000000e+00> : vector<8x128xf32>
      %146 = tpu.matmul %126, %64, %cst_84 {dimension_numbers = #tpu.dot_dimension_numbers<[1], [0], [0], [1], [0, 0, 1, 1], [], []>} : vector<8x32xf32>, vector<32x128xf32>, vector<8x128xf32> -> vector<8x128xf32>
      %147 = arith.addf %145, %146 : vector<8x128xf32>
      %148 = math.tanh %147 : vector<8x128xf32>
      %cst_85 = arith.constant 5.000000e-01 : f32
      %149 = vector.broadcast %cst_85 : f32 to vector<8x128xf32>
      %150 = arith.mulf %149, %148 : vector<8x128xf32>
      %cst_86 = arith.constant 5.000000e-01 : f32
      %151 = vector.broadcast %cst_86 : f32 to vector<8x128xf32>
      %152 = arith.addf %150, %151 : vector<8x128xf32>
      %153 = vector.extract_strided_slice %152 {offsets = [0, 0], sizes = [8, 32], strides = [1, 1]} : vector<8x128xf32> to vector<8x32xf32>
      %154 = vector.extract_strided_slice %152 {offsets = [0, 32], sizes = [8, 32], strides = [1, 1]} : vector<8x128xf32> to vector<8x32xf32>
      %155 = vector.extract_strided_slice %148 {offsets = [0, 64], sizes = [8, 32], strides = [1, 1]} : vector<8x128xf32> to vector<8x32xf32>
      %156 = vector.extract_strided_slice %152 {offsets = [0, 96], sizes = [8, 32], strides = [1, 1]} : vector<8x128xf32> to vector<8x32xf32>
      %157 = arith.mulf %154, %124 : vector<8x32xf32>
      %158 = arith.mulf %153, %155 : vector<8x32xf32>
      %159 = arith.addf %157, %158 : vector<8x32xf32>
      %160 = math.tanh %159 : vector<8x32xf32>
      %161 = arith.mulf %156, %160 : vector<8x32xf32>
      %c3_i32_87 = arith.constant 3 : i32
      %162 = arith.subi %arg17, %c3_i32_87 : i32
      %c2_i32 = arith.constant 2 : i32
      %163 = arith.addi %162, %c2_i32 : i32
      %c8_i32_88 = arith.constant 8 : i32
      %164 = arith.muli %163, %c8_i32_88 : i32
      %165 = tpu.assume_multiple %164, 8 : i32
      %c0_89 = arith.constant 0 : index
      %166 = arith.index_cast %165 : i32 to index
      %c0_90 = arith.constant 0 : index
      %167 = vector.load %arg1[%c0_89, %166, %c0_90] : memref<1x128x8xf32, #tpu.memory_space<vmem>>, vector<1x8x1xf32>
      %168 = vector.shape_cast %167 : vector<1x8x1xf32> to vector<8x1xf32>
      %169 = vector.broadcast %91 : f32 to vector<8x1xf32>
      %170 = arith.mulf %168, %169 : vector<8x1xf32>
      %cst_91 = arith.constant 1.000000e+00 : f32
      %171 = arith.subf %cst_91, %91 : f32
      %172 = vector.broadcast %171 : f32 to vector<8x1xf32>
      %173 = arith.mulf %arg23, %172 : vector<8x1xf32>
      %174 = arith.addf %170, %173 : vector<8x1xf32>
      %175 = vector.broadcast %174 : vector<8x1xf32> to vector<8x128xf32>
      %176 = vector.broadcast %61 : vector<1x128xf32> to vector<8x128xf32>
      %177 = arith.mulf %175, %176 : vector<8x128xf32>
      %178 = arith.index_cast %165 : i32 to index
      %c0_92 = arith.constant 0 : index
      %179 = vector.load %arg16[%178, %c0_92] : memref<128x128xf32, #tpu.memory_space<vmem>>, vector<8x128xf32>
      %180 = arith.addf %177, %179 : vector<8x128xf32>
      %cst_93 = arith.constant dense<0.000000e+00> : vector<8x128xf32>
      %181 = tpu.matmul %161, %64, %cst_93 {dimension_numbers = #tpu.dot_dimension_numbers<[1], [0], [0], [1], [0, 0, 1, 1], [], []>} : vector<8x32xf32>, vector<32x128xf32>, vector<8x128xf32> -> vector<8x128xf32>
      %182 = arith.addf %180, %181 : vector<8x128xf32>
      %183 = math.tanh %182 : vector<8x128xf32>
      %cst_94 = arith.constant 5.000000e-01 : f32
      %184 = vector.broadcast %cst_94 : f32 to vector<8x128xf32>
      %185 = arith.mulf %184, %183 : vector<8x128xf32>
      %cst_95 = arith.constant 5.000000e-01 : f32
      %186 = vector.broadcast %cst_95 : f32 to vector<8x128xf32>
      %187 = arith.addf %185, %186 : vector<8x128xf32>
      %188 = vector.extract_strided_slice %187 {offsets = [0, 0], sizes = [8, 32], strides = [1, 1]} : vector<8x128xf32> to vector<8x32xf32>
      %189 = vector.extract_strided_slice %187 {offsets = [0, 32], sizes = [8, 32], strides = [1, 1]} : vector<8x128xf32> to vector<8x32xf32>
      %190 = vector.extract_strided_slice %183 {offsets = [0, 64], sizes = [8, 32], strides = [1, 1]} : vector<8x128xf32> to vector<8x32xf32>
      %191 = vector.extract_strided_slice %187 {offsets = [0, 96], sizes = [8, 32], strides = [1, 1]} : vector<8x128xf32> to vector<8x32xf32>
      %192 = arith.mulf %189, %159 : vector<8x32xf32>
      %193 = arith.mulf %188, %190 : vector<8x32xf32>
      %194 = arith.addf %192, %193 : vector<8x32xf32>
      %195 = math.tanh %194 : vector<8x32xf32>
      %196 = arith.mulf %191, %195 : vector<8x32xf32>
      %c3_i32_96 = arith.constant 3 : i32
      %197 = arith.subi %arg17, %c3_i32_96 : i32
      %c3_i32_97 = arith.constant 3 : i32
      %198 = arith.addi %197, %c3_i32_97 : i32
      %c8_i32_98 = arith.constant 8 : i32
      %199 = arith.muli %198, %c8_i32_98 : i32
      %200 = tpu.assume_multiple %199, 8 : i32
      %c0_99 = arith.constant 0 : index
      %201 = arith.index_cast %200 : i32 to index
      %c0_100 = arith.constant 0 : index
      %202 = vector.load %arg1[%c0_99, %201, %c0_100] : memref<1x128x8xf32, #tpu.memory_space<vmem>>, vector<1x8x1xf32>
      %203 = vector.shape_cast %202 : vector<1x8x1xf32> to vector<8x1xf32>
      %204 = vector.broadcast %91 : f32 to vector<8x1xf32>
      %205 = arith.mulf %203, %204 : vector<8x1xf32>
      %cst_101 = arith.constant 1.000000e+00 : f32
      %206 = arith.subf %cst_101, %91 : f32
      %207 = vector.broadcast %206 : f32 to vector<8x1xf32>
      %208 = arith.mulf %arg20, %207 : vector<8x1xf32>
      %209 = arith.addf %205, %208 : vector<8x1xf32>
      %210 = vector.broadcast %209 : vector<8x1xf32> to vector<8x128xf32>
      %211 = vector.broadcast %61 : vector<1x128xf32> to vector<8x128xf32>
      %212 = arith.mulf %210, %211 : vector<8x128xf32>
      %213 = arith.index_cast %200 : i32 to index
      %c0_102 = arith.constant 0 : index
      %214 = vector.load %arg16[%213, %c0_102] : memref<128x128xf32, #tpu.memory_space<vmem>>, vector<8x128xf32>
      %215 = arith.addf %212, %214 : vector<8x128xf32>
      %cst_103 = arith.constant dense<0.000000e+00> : vector<8x128xf32>
      %216 = tpu.matmul %196, %64, %cst_103 {dimension_numbers = #tpu.dot_dimension_numbers<[1], [0], [0], [1], [0, 0, 1, 1], [], []>} : vector<8x32xf32>, vector<32x128xf32>, vector<8x128xf32> -> vector<8x128xf32>
      %217 = arith.addf %215, %216 : vector<8x128xf32>
      %218 = math.tanh %217 : vector<8x128xf32>
      %cst_104 = arith.constant 5.000000e-01 : f32
      %219 = vector.broadcast %cst_104 : f32 to vector<8x128xf32>
      %220 = arith.mulf %219, %218 : vector<8x128xf32>
      %cst_105 = arith.constant 5.000000e-01 : f32
      %221 = vector.broadcast %cst_105 : f32 to vector<8x128xf32>
      %222 = arith.addf %220, %221 : vector<8x128xf32>
      %223 = vector.extract_strided_slice %222 {offsets = [0, 0], sizes = [8, 32], strides = [1, 1]} : vector<8x128xf32> to vector<8x32xf32>
      %224 = vector.extract_strided_slice %222 {offsets = [0, 32], sizes = [8, 32], strides = [1, 1]} : vector<8x128xf32> to vector<8x32xf32>
      %225 = vector.extract_strided_slice %218 {offsets = [0, 64], sizes = [8, 32], strides = [1, 1]} : vector<8x128xf32> to vector<8x32xf32>
      %226 = vector.extract_strided_slice %222 {offsets = [0, 96], sizes = [8, 32], strides = [1, 1]} : vector<8x128xf32> to vector<8x32xf32>
      %227 = arith.mulf %224, %194 : vector<8x32xf32>
      %228 = arith.mulf %223, %225 : vector<8x32xf32>
      %229 = arith.addf %227, %228 : vector<8x32xf32>
      %230 = math.tanh %229 : vector<8x32xf32>
      %231 = arith.mulf %226, %230 : vector<8x32xf32>
      %cst_106 = arith.constant dense<0.000000e+00> : vector<8x32xf32>
      %232 = tpu.matmul %231, %65, %cst_106 {dimension_numbers = #tpu.dot_dimension_numbers<[1], [0], [0], [1], [0, 0, 1, 1], [], []>} : vector<8x32xf32>, vector<32x32xf32>, vector<8x32xf32> -> vector<8x32xf32>
      %233 = vector.broadcast %66 : vector<1x32xf32> to vector<8x32xf32>
      %234 = arith.addf %232, %233 : vector<8x32xf32>
      %cst_107 = arith.constant 0.000000e+00 : f32
      %235 = vector.broadcast %cst_107 : f32 to vector<8x32xf32>
      %236 = arith.maximumf %234, %235 : vector<8x32xf32>
      %237 = vector.broadcast %67 : vector<1x32xf32> to vector<8x32xf32>
      %238 = arith.mulf %236, %237 : vector<8x32xf32>
      %cst_108 = arith.constant dense<0.000000e+00> : vector<8xf32>
      %239 = vector.multi_reduction <add>, %238, %cst_108 [1] : vector<8x32xf32> to vector<8xf32>
      %240 = vector.shape_cast %239 : vector<8xf32> to vector<8x1xf32>
      %241 = vector.broadcast %68 : f32 to vector<8x1xf32>
      %242 = arith.addf %240, %241 : vector<8x1xf32>
      %c0_109 = arith.constant 0 : index
      %243 = arith.index_cast %85 : i32 to index
      %c1_110 = arith.constant 1 : index
      %244 = vector.load %arg15[%c0_109, %243, %c1_110] : memref<1x128x4xf32, #tpu.memory_space<vmem>>, vector<1x8x1xf32>
      %245 = vector.shape_cast %244 : vector<1x8x1xf32> to vector<8x1xf32>
      %246 = vector.shape_cast %242 : vector<8x1xf32> to vector<1x8x1xf32>
      tpu.vector_store %arg15[%c0_109, %243, %c1_110], %246 {strides = array<i32>} : memref<1x128x4xf32, #tpu.memory_space<vmem>>, vector<1x8x1xf32>,
      %c0_111 = arith.constant 0 : index
      %247 = arith.index_cast %85 : i32 to index
      %c2 = arith.constant 2 : index
      %248 = vector.load %arg15[%c0_111, %247, %c2] : memref<1x128x4xf32, #tpu.memory_space<vmem>>, vector<1x8x2xf32>
      %249 = vector.shape_cast %248 : vector<1x8x2xf32> to vector<8x2xf32>
      %cst_112 = arith.constant dense<0.000000e+00> : vector<8xf32>
      %250 = vector.multi_reduction <add>, %249, %cst_112 [1] : vector<8x2xf32> to vector<8xf32>
      %251 = vector.shape_cast %250 : vector<8xf32> to vector<8x1xf32>
      %252 = arith.addf %242, %251 : vector<8x1xf32>
      %253 = vector.broadcast %91 : f32 to vector<8x1xf32>
      %254 = arith.mulf %253, %203 : vector<8x1xf32>
      %cst_113 = arith.constant 1.000000e+00 : f32
      %255 = arith.subf %cst_113, %91 : f32
      %256 = vector.broadcast %255 : f32 to vector<8x1xf32>
      %257 = arith.mulf %256, %arg20 : vector<8x1xf32>
      %258 = arith.addf %254, %257 : vector<8x1xf32>
      %259 = vector.broadcast %69 : f32 to vector<8x1xf32>
      %260 = arith.mulf %252, %259 : vector<8x1xf32>
      %261 = arith.addf %258, %260 : vector<8x1xf32>
      scf.yield %231, %229, %261, %arg22, %arg23, %arg20 : vector<8x32xf32>, vector<8x32xf32>, vector<8x1xf32>, vector<8x1xf32>, vector<8x1xf32>, vector<8x1xf32>
    }
    %c8_i32_61 = arith.constant 8 : i32
    %c12_i32 = arith.constant 12 : i32
    %c4_i32_62 = arith.constant 4 : i32
    %82 = arith.addi %c12_i32, %c4_i32_62 : i32
    %c1_i32_63 = arith.constant 1 : i32
    %83:6 = scf.for %arg17 = %c12_i32 to %82 step %c1_i32_63 iter_args(%arg18 = %81#0, %arg19 = %81#1, %arg20 = %81#2, %arg21 = %81#3, %arg22 = %81#4, %arg23 = %81#5) -> (vector<8x32xf32>, vector<8x32xf32>, vector<8x1xf32>, vector<8x1xf32>, vector<8x1xf32>, vector<8x1xf32>)  : i32 {
      %c8_i32_65 = arith.constant 8 : i32
      %84 = arith.muli %arg17, %c8_i32_65 : i32
      %85 = tpu.assume_multiple %84, 8 : i32
      %c0_66 = arith.constant 0 : index
      %86 = arith.index_cast %85 : i32 to index
      %c0_67 = arith.constant 0 : index
      %87 = vector.load %arg15[%c0_66, %86, %c0_67] : memref<1x128x4xf32, #tpu.memory_space<vmem>>, vector<1x8x1xf32>
      %88 = vector.shape_cast %87 : vector<1x8x1xf32> to vector<8x1xf32>
      %89 = vector.shape_cast %arg20 : vector<8x1xf32> to vector<1x8x1xf32>
      tpu.vector_store %arg15[%c0_66, %86, %c0_67], %89 {strides = array<i32>} : memref<1x128x4xf32, #tpu.memory_space<vmem>>, vector<1x8x1xf32>,
      %c3_i32 = arith.constant 3 : i32
      %90 = arith.subi %arg17, %c3_i32 : i32
      %c0_i32 = arith.constant 0 : i32
      %91 = arith.addi %90, %c0_i32 : i32
      %c8_i32_68 = arith.constant 8 : i32
      %92 = arith.muli %91, %c8_i32_68 : i32
      %93 = tpu.assume_multiple %92, 8 : i32
      %94 = vector.broadcast %arg21 : vector<8x1xf32> to vector<8x128xf32>
      %95 = vector.broadcast %61 : vector<1x128xf32> to vector<8x128xf32>
      %96 = arith.mulf %94, %95 : vector<8x128xf32>
      %97 = arith.index_cast %93 : i32 to index
      %c0_69 = arith.constant 0 : index
      %98 = vector.load %arg16[%97, %c0_69] : memref<128x128xf32, #tpu.memory_space<vmem>>, vector<8x128xf32>
      %99 = arith.addf %96, %98 : vector<8x128xf32>
      %cst_70 = arith.constant dense<0.000000e+00> : vector<8x128xf32>
      %100 = tpu.matmul %arg18, %64, %cst_70 {dimension_numbers = #tpu.dot_dimension_numbers<[1], [0], [0], [1], [0, 0, 1, 1], [], []>} : vector<8x32xf32>, vector<32x128xf32>, vector<8x128xf32> -> vector<8x128xf32>
      %101 = arith.addf %99, %100 : vector<8x128xf32>
      %102 = math.tanh %101 : vector<8x128xf32>
      %cst_71 = arith.constant 5.000000e-01 : f32
      %103 = vector.broadcast %cst_71 : f32 to vector<8x128xf32>
      %104 = arith.mulf %103, %102 : vector<8x128xf32>
      %cst_72 = arith.constant 5.000000e-01 : f32
      %105 = vector.broadcast %cst_72 : f32 to vector<8x128xf32>
      %106 = arith.addf %104, %105 : vector<8x128xf32>
      %107 = vector.extract_strided_slice %106 {offsets = [0, 0], sizes = [8, 32], strides = [1, 1]} : vector<8x128xf32> to vector<8x32xf32>
      %108 = vector.extract_strided_slice %106 {offsets = [0, 32], sizes = [8, 32], strides = [1, 1]} : vector<8x128xf32> to vector<8x32xf32>
      %109 = vector.extract_strided_slice %102 {offsets = [0, 64], sizes = [8, 32], strides = [1, 1]} : vector<8x128xf32> to vector<8x32xf32>
      %110 = vector.extract_strided_slice %106 {offsets = [0, 96], sizes = [8, 32], strides = [1, 1]} : vector<8x128xf32> to vector<8x32xf32>
      %111 = arith.mulf %108, %arg19 : vector<8x32xf32>
      %112 = arith.mulf %107, %109 : vector<8x32xf32>
      %113 = arith.addf %111, %112 : vector<8x32xf32>
      %114 = math.tanh %113 : vector<8x32xf32>
      %115 = arith.mulf %110, %114 : vector<8x32xf32>
      %c3_i32_73 = arith.constant 3 : i32
      %116 = arith.subi %arg17, %c3_i32_73 : i32
      %c1_i32_74 = arith.constant 1 : i32
      %117 = arith.addi %116, %c1_i32_74 : i32
      %c8_i32_75 = arith.constant 8 : i32
      %118 = arith.muli %117, %c8_i32_75 : i32
      %119 = tpu.assume_multiple %118, 8 : i32
      %120 = vector.broadcast %arg22 : vector<8x1xf32> to vector<8x128xf32>
      %121 = vector.broadcast %61 : vector<1x128xf32> to vector<8x128xf32>
      %122 = arith.mulf %120, %121 : vector<8x128xf32>
      %123 = arith.index_cast %119 : i32 to index
      %c0_76 = arith.constant 0 : index
      %124 = vector.load %arg16[%123, %c0_76] : memref<128x128xf32, #tpu.memory_space<vmem>>, vector<8x128xf32>
      %125 = arith.addf %122, %124 : vector<8x128xf32>
      %cst_77 = arith.constant dense<0.000000e+00> : vector<8x128xf32>
      %126 = tpu.matmul %115, %64, %cst_77 {dimension_numbers = #tpu.dot_dimension_numbers<[1], [0], [0], [1], [0, 0, 1, 1], [], []>} : vector<8x32xf32>, vector<32x128xf32>, vector<8x128xf32> -> vector<8x128xf32>
      %127 = arith.addf %125, %126 : vector<8x128xf32>
      %128 = math.tanh %127 : vector<8x128xf32>
      %cst_78 = arith.constant 5.000000e-01 : f32
      %129 = vector.broadcast %cst_78 : f32 to vector<8x128xf32>
      %130 = arith.mulf %129, %128 : vector<8x128xf32>
      %cst_79 = arith.constant 5.000000e-01 : f32
      %131 = vector.broadcast %cst_79 : f32 to vector<8x128xf32>
      %132 = arith.addf %130, %131 : vector<8x128xf32>
      %133 = vector.extract_strided_slice %132 {offsets = [0, 0], sizes = [8, 32], strides = [1, 1]} : vector<8x128xf32> to vector<8x32xf32>
      %134 = vector.extract_strided_slice %132 {offsets = [0, 32], sizes = [8, 32], strides = [1, 1]} : vector<8x128xf32> to vector<8x32xf32>
      %135 = vector.extract_strided_slice %128 {offsets = [0, 64], sizes = [8, 32], strides = [1, 1]} : vector<8x128xf32> to vector<8x32xf32>
      %136 = vector.extract_strided_slice %132 {offsets = [0, 96], sizes = [8, 32], strides = [1, 1]} : vector<8x128xf32> to vector<8x32xf32>
      %137 = arith.mulf %134, %113 : vector<8x32xf32>
      %138 = arith.mulf %133, %135 : vector<8x32xf32>
      %139 = arith.addf %137, %138 : vector<8x32xf32>
      %140 = math.tanh %139 : vector<8x32xf32>
      %141 = arith.mulf %136, %140 : vector<8x32xf32>
      %c3_i32_80 = arith.constant 3 : i32
      %142 = arith.subi %arg17, %c3_i32_80 : i32
      %c2_i32 = arith.constant 2 : i32
      %143 = arith.addi %142, %c2_i32 : i32
      %c8_i32_81 = arith.constant 8 : i32
      %144 = arith.muli %143, %c8_i32_81 : i32
      %145 = tpu.assume_multiple %144, 8 : i32
      %146 = vector.broadcast %arg23 : vector<8x1xf32> to vector<8x128xf32>
      %147 = vector.broadcast %61 : vector<1x128xf32> to vector<8x128xf32>
      %148 = arith.mulf %146, %147 : vector<8x128xf32>
      %149 = arith.index_cast %145 : i32 to index
      %c0_82 = arith.constant 0 : index
      %150 = vector.load %arg16[%149, %c0_82] : memref<128x128xf32, #tpu.memory_space<vmem>>, vector<8x128xf32>
      %151 = arith.addf %148, %150 : vector<8x128xf32>
      %cst_83 = arith.constant dense<0.000000e+00> : vector<8x128xf32>
      %152 = tpu.matmul %141, %64, %cst_83 {dimension_numbers = #tpu.dot_dimension_numbers<[1], [0], [0], [1], [0, 0, 1, 1], [], []>} : vector<8x32xf32>, vector<32x128xf32>, vector<8x128xf32> -> vector<8x128xf32>
      %153 = arith.addf %151, %152 : vector<8x128xf32>
      %154 = math.tanh %153 : vector<8x128xf32>
      %cst_84 = arith.constant 5.000000e-01 : f32
      %155 = vector.broadcast %cst_84 : f32 to vector<8x128xf32>
      %156 = arith.mulf %155, %154 : vector<8x128xf32>
      %cst_85 = arith.constant 5.000000e-01 : f32
      %157 = vector.broadcast %cst_85 : f32 to vector<8x128xf32>
      %158 = arith.addf %156, %157 : vector<8x128xf32>
      %159 = vector.extract_strided_slice %158 {offsets = [0, 0], sizes = [8, 32], strides = [1, 1]} : vector<8x128xf32> to vector<8x32xf32>
      %160 = vector.extract_strided_slice %158 {offsets = [0, 32], sizes = [8, 32], strides = [1, 1]} : vector<8x128xf32> to vector<8x32xf32>
      %161 = vector.extract_strided_slice %154 {offsets = [0, 64], sizes = [8, 32], strides = [1, 1]} : vector<8x128xf32> to vector<8x32xf32>
      %162 = vector.extract_strided_slice %158 {offsets = [0, 96], sizes = [8, 32], strides = [1, 1]} : vector<8x128xf32> to vector<8x32xf32>
      %163 = arith.mulf %160, %139 : vector<8x32xf32>
      %164 = arith.mulf %159, %161 : vector<8x32xf32>
      %165 = arith.addf %163, %164 : vector<8x32xf32>
      %166 = math.tanh %165 : vector<8x32xf32>
      %167 = arith.mulf %162, %166 : vector<8x32xf32>
      %c3_i32_86 = arith.constant 3 : i32
      %168 = arith.subi %arg17, %c3_i32_86 : i32
      %c3_i32_87 = arith.constant 3 : i32
      %169 = arith.addi %168, %c3_i32_87 : i32
      %c8_i32_88 = arith.constant 8 : i32
      %170 = arith.muli %169, %c8_i32_88 : i32
      %171 = tpu.assume_multiple %170, 8 : i32
      %172 = vector.broadcast %arg20 : vector<8x1xf32> to vector<8x128xf32>
      %173 = vector.broadcast %61 : vector<1x128xf32> to vector<8x128xf32>
      %174 = arith.mulf %172, %173 : vector<8x128xf32>
      %175 = arith.index_cast %171 : i32 to index
      %c0_89 = arith.constant 0 : index
      %176 = vector.load %arg16[%175, %c0_89] : memref<128x128xf32, #tpu.memory_space<vmem>>, vector<8x128xf32>
      %177 = arith.addf %174, %176 : vector<8x128xf32>
      %cst_90 = arith.constant dense<0.000000e+00> : vector<8x128xf32>
      %178 = tpu.matmul %167, %64, %cst_90 {dimension_numbers = #tpu.dot_dimension_numbers<[1], [0], [0], [1], [0, 0, 1, 1], [], []>} : vector<8x32xf32>, vector<32x128xf32>, vector<8x128xf32> -> vector<8x128xf32>
      %179 = arith.addf %177, %178 : vector<8x128xf32>
      %180 = math.tanh %179 : vector<8x128xf32>
      %cst_91 = arith.constant 5.000000e-01 : f32
      %181 = vector.broadcast %cst_91 : f32 to vector<8x128xf32>
      %182 = arith.mulf %181, %180 : vector<8x128xf32>
      %cst_92 = arith.constant 5.000000e-01 : f32
      %183 = vector.broadcast %cst_92 : f32 to vector<8x128xf32>
      %184 = arith.addf %182, %183 : vector<8x128xf32>
      %185 = vector.extract_strided_slice %184 {offsets = [0, 0], sizes = [8, 32], strides = [1, 1]} : vector<8x128xf32> to vector<8x32xf32>
      %186 = vector.extract_strided_slice %184 {offsets = [0, 32], sizes = [8, 32], strides = [1, 1]} : vector<8x128xf32> to vector<8x32xf32>
      %187 = vector.extract_strided_slice %180 {offsets = [0, 64], sizes = [8, 32], strides = [1, 1]} : vector<8x128xf32> to vector<8x32xf32>
      %188 = vector.extract_strided_slice %184 {offsets = [0, 96], sizes = [8, 32], strides = [1, 1]} : vector<8x128xf32> to vector<8x32xf32>
      %189 = arith.mulf %186, %165 : vector<8x32xf32>
      %190 = arith.mulf %185, %187 : vector<8x32xf32>
      %191 = arith.addf %189, %190 : vector<8x32xf32>
      %192 = math.tanh %191 : vector<8x32xf32>
      %193 = arith.mulf %188, %192 : vector<8x32xf32>
      %cst_93 = arith.constant dense<0.000000e+00> : vector<8x32xf32>
      %194 = tpu.matmul %193, %65, %cst_93 {dimension_numbers = #tpu.dot_dimension_numbers<[1], [0], [0], [1], [0, 0, 1, 1], [], []>} : vector<8x32xf32>, vector<32x32xf32>, vector<8x32xf32> -> vector<8x32xf32>
      %195 = vector.broadcast %66 : vector<1x32xf32> to vector<8x32xf32>
      %196 = arith.addf %194, %195 : vector<8x32xf32>
      %cst_94 = arith.constant 0.000000e+00 : f32
      %197 = vector.broadcast %cst_94 : f32 to vector<8x32xf32>
      %198 = arith.maximumf %196, %197 : vector<8x32xf32>
      %199 = vector.broadcast %67 : vector<1x32xf32> to vector<8x32xf32>
      %200 = arith.mulf %198, %199 : vector<8x32xf32>
      %cst_95 = arith.constant dense<0.000000e+00> : vector<8xf32>
      %201 = vector.multi_reduction <add>, %200, %cst_95 [1] : vector<8x32xf32> to vector<8xf32>
      %202 = vector.shape_cast %201 : vector<8xf32> to vector<8x1xf32>
      %203 = vector.broadcast %68 : f32 to vector<8x1xf32>
      %204 = arith.addf %202, %203 : vector<8x1xf32>
      %c0_96 = arith.constant 0 : index
      %205 = arith.index_cast %85 : i32 to index
      %c1_97 = arith.constant 1 : index
      %206 = vector.load %arg15[%c0_96, %205, %c1_97] : memref<1x128x4xf32, #tpu.memory_space<vmem>>, vector<1x8x1xf32>
      %207 = vector.shape_cast %206 : vector<1x8x1xf32> to vector<8x1xf32>
      %208 = vector.shape_cast %204 : vector<8x1xf32> to vector<1x8x1xf32>
      tpu.vector_store %arg15[%c0_96, %205, %c1_97], %208 {strides = array<i32>} : memref<1x128x4xf32, #tpu.memory_space<vmem>>, vector<1x8x1xf32>,
      %c0_98 = arith.constant 0 : index
      %209 = arith.index_cast %85 : i32 to index
      %c2 = arith.constant 2 : index
      %210 = vector.load %arg15[%c0_98, %209, %c2] : memref<1x128x4xf32, #tpu.memory_space<vmem>>, vector<1x8x2xf32>
      %211 = vector.shape_cast %210 : vector<1x8x2xf32> to vector<8x2xf32>
      %cst_99 = arith.constant dense<0.000000e+00> : vector<8xf32>
      %212 = vector.multi_reduction <add>, %211, %cst_99 [1] : vector<8x2xf32> to vector<8xf32>
      %213 = vector.shape_cast %212 : vector<8xf32> to vector<8x1xf32>
      %214 = arith.addf %204, %213 : vector<8x1xf32>
      %215 = vector.broadcast %69 : f32 to vector<8x1xf32>
      %216 = arith.mulf %214, %215 : vector<8x1xf32>
      %217 = arith.addf %216, %arg20 : vector<8x1xf32>
      scf.yield %193, %191, %217, %arg22, %arg23, %arg20 : vector<8x32xf32>, vector<8x32xf32>, vector<8x1xf32>, vector<8x1xf32>, vector<8x1xf32>, vector<8x1xf32>
    }
    %c4_i32_64 = arith.constant 4 : i32
    return
  }
  func.func @transform_0(%arg0: i32) -> (i32, i32, i32) {
    %c0_i32 = arith.constant 0 : i32
    %c0_i32_0 = arith.constant 0 : i32
    %c0_i32_1 = arith.constant 0 : i32
    return %arg0, %c0_i32, %c0_i32_0 : i32, i32, i32
  }
  func.func @transform_1(%arg0: i32) -> (i32, i32) {
    %c0_i32 = arith.constant 0 : i32
    %c0_i32_0 = arith.constant 0 : i32
    %c0_i32_1 = arith.constant 0 : i32
    return %c0_i32, %c0_i32_0 : i32, i32
  }
  func.func @transform_2(%arg0: i32) -> (i32, i32) {
    %c0_i32 = arith.constant 0 : i32
    %c0_i32_0 = arith.constant 0 : i32
    %c0_i32_1 = arith.constant 0 : i32
    return %c0_i32, %c0_i32_0 : i32, i32
  }
  func.func @transform_3(%arg0: i32) -> (i32, i32) {
    %c0_i32 = arith.constant 0 : i32
    %c0_i32_0 = arith.constant 0 : i32
    %c0_i32_1 = arith.constant 0 : i32
    return %c0_i32, %c0_i32_0 : i32, i32
  }
  func.func @transform_4(%arg0: i32) -> (i32, i32) {
    %c0_i32 = arith.constant 0 : i32
    %c0_i32_0 = arith.constant 0 : i32
    %c0_i32_1 = arith.constant 0 : i32
    return %c0_i32, %c0_i32_0 : i32, i32
  }
  func.func @transform_5(%arg0: i32) -> (i32, i32) {
    %c0_i32 = arith.constant 0 : i32
    %c0_i32_0 = arith.constant 0 : i32
    %c0_i32_1 = arith.constant 0 : i32
    return %c0_i32, %c0_i32_0 : i32, i32
  }
  func.func @transform_6(%arg0: i32) -> (i32, i32) {
    %c0_i32 = arith.constant 0 : i32
    %c0_i32_0 = arith.constant 0 : i32
    %c0_i32_1 = arith.constant 0 : i32
    return %c0_i32, %c0_i32_0 : i32, i32
  }
  func.func @transform_7(%arg0: i32) -> (i32, i32) {
    %c0_i32 = arith.constant 0 : i32
    %c0_i32_0 = arith.constant 0 : i32
    %c0_i32_1 = arith.constant 0 : i32
    return %c0_i32, %c0_i32_0 : i32, i32
  }
  func.func @transform_8(%arg0: i32) -> (i32, i32) {
    %c0_i32 = arith.constant 0 : i32
    %c0_i32_0 = arith.constant 0 : i32
    %c0_i32_1 = arith.constant 0 : i32
    return %c0_i32, %c0_i32_0 : i32, i32
  }
  func.func @transform_9(%arg0: i32) -> (i32, i32) {
    %c0_i32 = arith.constant 0 : i32
    %c0_i32_0 = arith.constant 0 : i32
    %c0_i32_1 = arith.constant 0 : i32
    return %c0_i32, %c0_i32_0 : i32, i32
  }
  func.func @transform_10(%arg0: i32) -> (i32, i32) {
    %c0_i32 = arith.constant 0 : i32
    %c0_i32_0 = arith.constant 0 : i32
    %c0_i32_1 = arith.constant 0 : i32
    return %c0_i32, %c0_i32_0 : i32, i32
  }
  func.func @transform_11(%arg0: i32) -> (i32, i32) {
    %c0_i32 = arith.constant 0 : i32
    %c0_i32_0 = arith.constant 0 : i32
    %c0_i32_1 = arith.constant 0 : i32
    return %c0_i32, %c0_i32_0 : i32, i32
  }
  func.func @transform_12(%arg0: i32) -> (i32, i32) {
    %c0_i32 = arith.constant 0 : i32
    %c0_i32_0 = arith.constant 0 : i32
    %c0_i32_1 = arith.constant 0 : i32
    return %c0_i32, %c0_i32_0 : i32, i32
  }
  func.func @transform_13(%arg0: i32) -> (i32, i32) {
    %c0_i32 = arith.constant 0 : i32
    %c0_i32_0 = arith.constant 0 : i32
    %c0_i32_1 = arith.constant 0 : i32
    return %c0_i32, %c0_i32_0 : i32, i32
  }
  func.func @transform_14(%arg0: i32) -> (i32, i32, i32) {
    %c0_i32 = arith.constant 0 : i32
    %c0_i32_0 = arith.constant 0 : i32
    %c0_i32_1 = arith.constant 0 : i32
    return %arg0, %c0_i32, %c0_i32_0 : i32, i32, i32
  }
}

</mosaic_0001>

<bundles_post_ra>
// kernel: modnn_forward.1
= control target key start
LH: loop header
LB: loop body
LE: loop exit
PB: predicated region body
PF: predicated region fallthrough
CT: control target
= control target key end

     0   :  { %s2864_s17 = smov 125   ;;  %vm450_vm0 = vcmask 1042432   ;;  %vm417_vm1 = vcmask 23552   ;;  %v51_v33 = vlaneseq  ;;  %vm162_vm2 = vcmask 1043456   ;;  %s3790_s0 = inlined_call_operand.vmem [shape: f32[1,128,8], index: 0, kind: input, shape index: {}]   ;;  %s3791_s7 = inlined_call_operand.vmem [shape: f32[3,16], index: 7, kind: input, shape index: {}]   ;;  %s3792_s1 = inlined_call_operand.vmem [shape: f32[5,128], index: 1, kind: input, shape index: {}]   ;;  %s3793_s10 = inlined_call_operand.<no memory space> [shape: f32[1,1], index: 10, kind: input, shape index: {}]   ;;  %s3794_s13 = inlined_call_operand.<no memory space> [shape: f32[1,1], index: 13, kind: input, shape index: {}]   ;;  %s3795_s2 = inlined_call_operand.vmem [shape: f32[32,128], index: 2, kind: input, shape index: {}]   ;;  %s3796_s14 = inlined_call_operand.vmem [shape: f32[1,128,4], index: 14, kind: output, shape index: {}]   ;;  %s3797_s8 = inlined_call_operand.vmem [shape: f32[1,16], index: 8, kind: input, shape index: {}]   ;;  %s3798_s9 = inlined_call_operand.vmem [shape: f32[1,16], index: 9, kind: input, shape index: {}]   ;;  %s3799_s3 = inlined_call_operand.vmem [shape: f32[1,128], index: 3, kind: input, shape index: {}]   ;;  %s3800_s4 = inlined_call_operand.vmem [shape: f32[32,32], index: 4, kind: input, shape index: {}]   ;;  %s3801_s5 = inlined_call_operand.vmem [shape: f32[1,32], index: 5, kind: input, shape index: {}]   ;;  %s3802_s6 = inlined_call_operand.vmem [shape: f32[1,32], index: 6, kind: input, shape index: {}]   ;;  %s3803_s11 = inlined_call_operand.<no memory space> [shape: f32[1,1], index: 11, kind: input, shape index: {}]   ;;  %s3804_s12 = inlined_call_operand.<no memory space> [shape: f32[1,1], index: 12, kind: input, shape index: {}]  }
   0x1   :  { %v2960_v0 = vld [vmem:[%s3790_s0] sm:$0xff]  ;;  %v2965_v1 = vld [vmem:[%s3790_s0 + $0x10] sm:$0xff]   ;;  %v2974_v2 = vld [vmem:[%s3790_s0 + $0x8] sm:$0xff]   ;;  %vm129_vm3 = vcmask 31744   ;;  %v2867_v45 = vmov 0.5   ;;  %vm882_vm7 = vcmask 7168  }
   0x2   :  { %385 = vrot.lane.b32.xlu0 %v2960_v0, %s2864_s17  ;;  %389 = vrot.lane.b32.xlu1 %v2965_v1, %s2864_s17  ;;  %v2979_v3 = vld [vmem:[%s3790_s0 + $0x18] sm:$0xff]   ;;  %v2988_v4 = vld [vmem:[%s3790_s0 + $0x20] sm:$0xff]   ;;  %v52_v37 = vand.u32 127, %v51_v33  ;;  %vm899_vm8 = vcmask 15360   ;;  %vm638_vm9 = vcmask 130048  }
   0x3   :  { %v2993_v5 = vld [vmem:[%s3790_s0 + $0x28] sm:$0xff]  ;;  %v361_v6 = vld [vmem:[%s3791_s7] sm:$0x7]  ;;  %v3005_v7 = vld [vmem:[%s3790_s0 + $0x30] sm:$0xff]  ;;  %s2865_s7 = smov 127  }
   0x4   :  { %2366 = vmatprep.subr.msk.mxu1 %vm450_vm0, %v361_v6  ;;  %v3010_v8 = vld [vmem:[%s3790_s0 + $0x38] sm:$0xff]  ;;  %v3019_v9 = vld [vmem:[%s3790_s0 + $0x40] sm:$0xff]  ;;  %v3024_v10 = vld [vmem:[%s3790_s0 + $0x48] sm:$0xff]  ;;  %vm53_vm4 = vcmp.ge.s32.totalorder %v52_v37, 64  ;;  %vm54_vm5 = vcmp.lt.s32.totalorder %v52_v37, 96 }
   0x5   :  { %2367 = vmatpush3.msk.msra.mxu1 %vm450_vm0, %v361_v6  ;;  %v3033_v11 = vld [vmem:[%s3790_s0 + $0x50] sm:$0xff]  ;;  %v3038_v12 = vld [vmem:[%s3790_s0 + $0x58] sm:$0xff]  ;;  %v3047_v13 = vld [vmem:[%s3790_s0 + $0x60] sm:$0xff] }
   0x6   :  { %387 = vrot.lane.b32.xlu0 %v2974_v2, %s2864_s17  ;;  %391 = vrot.lane.b32.xlu1 %v2979_v3, %s2864_s17  ;;  %v3052_v14 = vld [vmem:[%s3790_s0 + $0x68] sm:$0xff]  ;;  %v3061_v15 = vld [vmem:[%s3790_s0 + $0x70] sm:$0xff]  ;;  %vm55_vm6 = vmand %vm53_vm4, %vm54_vm5 }
   0x7   :  { %v3066_v16 = vld [vmem:[%s3790_s0 + $0x78] sm:$0xff]  ;;  %v73_v34 = vld [vmem:[%s3792_s1 + $0x1] sm:$0xf]  ;;  %v948_v38 = vld [vmem:[%s3792_s1] sm:$0x1]  ;;  %v3150_v46 = vsel %vm55_vm6, 1.0, %v2867_v45 }
   0x8   :  { %2340 = vmatprep.subr.msk.mxu0 %vm162_vm2, %v73_v34  ;;  %v950_v39 = vld [vmem:[%s3795_s2] sm:$0xff]  ;;  %v951_v40 = vld [vmem:[%s3795_s2 + $0x8] sm:$0xff]  ;;  %v952_v41 = vld [vmem:[%s3795_s2 + $0x10] sm:$0xff]  ;;  %v3153_v47 = vmul.f32 %v948_v38, %v3150_v46 }
   0x9   :  { %2341 = vmatpush3.msk.msra.mxu0 %vm162_vm2, %v73_v34  ;;  %v953_v44 = vld [vmem:[%s3795_s2 + $0x18] sm:$0xff]  ;;  %v3156_v48 = vmul.f32 %v950_v39, %v3150_v46  ;;  %v3159_v49 = vmul.f32 %v951_v40, %v3150_v46  ;;  %v3162_v50 = vmul.f32 %v952_v41, %v3150_v46  ;;  %v3218_v41 = vld [vmem:[%s3798_s9] ss:$0 sm:$0xff] }
   0xa   :  { %393 = vrot.lane.b32.xlu0 %v2988_v4, %s2864_s17  ;;  %395 = vrot.lane.b32.xlu1 %v2993_v5, %s2864_s17  ;;  %v3166_v51 = vmul.f32 %v953_v44, %v3150_v46 }
   0xe   :  { %397 = vrot.lane.b32.xlu0 %v3005_v7, %s2864_s17  ;;  %399 = vrot.lane.b32.xlu1 %v3010_v8, %s2864_s17 }
  0x12   :  { %401 = vrot.lane.b32.xlu0 %v3019_v9, %s2864_s17  ;;  %403 = vrot.lane.b32.xlu1 %v3024_v10, %s2864_s17 }
  0x16   :  { %405 = vrot.lane.b32.xlu0 %v3033_v11, %s2864_s17  ;;  %407 = vrot.lane.b32.xlu1 %v3038_v12, %s2864_s17 }
  0x1a   :  { %409 = vrot.lane.b32.xlu0 %v3047_v13, %s2864_s17  ;;  %411 = vrot.lane.b32.xlu1 %v3052_v14, %s2864_s17 }
  0x1e   :  { %413 = vrot.lane.b32.xlu0 %v3061_v15, %s2864_s17  ;;  %415 = vrot.lane.b32.xlu1 %v3066_v16, %s2864_s17  ;;  %s2866_s17 = smov 124  }
  0x22   :  { %97 = vrot.lane.b32.xlu0 %v2960_v0, %s2865_s7  ;;  %99 = vrot.lane.b32.xlu1 %v2974_v2, %s2865_s7 }
  0x26   :  { %101 = vrot.lane.b32.xlu0 %v2965_v1, %s2865_s7  ;;  %103 = vrot.lane.b32.xlu1 %v2979_v3, %s2865_s7 }
  0x2a   :  { %105 = vrot.lane.b32.xlu0 %v2988_v4, %s2865_s7  ;;  %107 = vrot.lane.b32.xlu1 %v2993_v5, %s2865_s7 }
  0x2e   :  { %109 = vrot.lane.b32.xlu0 %v3005_v7, %s2865_s7  ;;  %111 = vrot.lane.b32.xlu1 %v3010_v8, %s2865_s7 }
  0x32   :  { %113 = vrot.lane.b32.xlu0 %v3019_v9, %s2865_s7  ;;  %115 = vrot.lane.b32.xlu1 %v3024_v10, %s2865_s7 }
  0x36   :  { %117 = vrot.lane.b32.xlu0 %v3033_v11, %s2865_s7  ;;  %119 = vrot.lane.b32.xlu1 %v3038_v12, %s2865_s7 }
  0x3a   :  { %121 = vrot.lane.b32.xlu0 %v3047_v13, %s2865_s7  ;;  %123 = vrot.lane.b32.xlu1 %v3052_v14, %s2865_s7 }
  0x3e   :  { %125 = vrot.lane.b32.xlu0 %v3061_v15, %s2865_s7  ;;  %127 = vrot.lane.b32.xlu1 %v3066_v16, %s2865_s7 }
  0x42   :  { %834 = vrot.lane.b32.xlu1 %v2960_v0, %s2866_s17  ;;  %836 = vrot.lane.b32.xlu0 %v2974_v2, %s2866_s17 }
  0x46   :  { %838 = vrot.lane.b32.xlu1 %v2965_v1, %s2866_s17  ;;  %842 = vrot.lane.b32.xlu0 %v2988_v4, %s2866_s17 }
  0x4a   :  { %840 = vrot.lane.b32.xlu1 %v2979_v3, %s2866_s17  ;;  %846 = vrot.lane.b32.xlu0 %v3005_v7, %s2866_s17 }
  0x4e   :  { %844 = vrot.lane.b32.xlu1 %v2993_v5, %s2866_s17  ;;  %850 = vrot.lane.b32.xlu0 %v3019_v9, %s2866_s17 }
  0x52   :  { %848 = vrot.lane.b32.xlu1 %v3010_v8, %s2866_s17  ;;  %854 = vrot.lane.b32.xlu0 %v3033_v11, %s2866_s17 }
  0x56   :  { %852 = vrot.lane.b32.xlu1 %v3024_v10, %s2866_s17 }
  0x5a   :  { %856 = vrot.lane.b32.xlu1 %v3038_v12, %s2866_s17 }
  0x74   :  { %v386_v17 = vpop.permute.xlu0 %385  ;;  %v390_v18 = vpop.permute.xlu1 %389 }
  0x75   :  { %2368 = vmatprep.mubr.msk.f32.mxu1 %vm417_vm1, %v386_v17  ;;  %v883_v17 = vsel %vm882_vm7, %v2960_v0, 0.0  ;;  %v886_v0 = vsel %vm882_vm7, %v2979_v3, 0.0 }
  0x78   :  { %v388_v19 = vpop.permute.xlu0 %387  ;;  %v392_v20 = vpop.permute.xlu1 %391 }
  0x79   :  { %2369 = vmatmul.mubr.msk.f32.vlgmr.msra.gmra.mrb[0].mxu1 %vm417_vm1, %v388_v19  ;;  %v885_v19 = vsel %vm882_vm7, %v2965_v1, 0.0 }
  0x7a   :  { %2371 = vmatprep.mubr.msk.f32.mxu1 %vm417_vm1, %v390_v18 }
  0x7c   :  { %v394_v21 = vpop.permute.xlu0 %393  ;;  %v396_v22 = vpop.permute.xlu1 %395 }
  0x7d   :  { %2372 = vmatmul.mubr.msk.f32.gmra.mrb[2].mxu1 %vm417_vm1, %v392_v20 }
  0x7e   :  { %2374 = vmatprep.mubr.msk.f32.mxu1 %vm417_vm1, %v394_v21 }
  0x80   :  { %v398_v23 = vpop.permute.xlu0 %397  ;;  %v400_v24 = vpop.permute.xlu1 %399 }
  0x81   :  { %2375 = vmatmul.mubr.msk.f32.gmra.mrb[4].mxu1 %vm417_vm1, %v396_v22 }
  0x82   :  { %2377 = vmatprep.mubr.msk.f32.mxu1 %vm417_vm1, %v398_v23 }
  0x84   :  { %v402_v25 = vpop.permute.xlu0 %401  ;;  %v404_v26 = vpop.permute.xlu1 %403 }
  0x85   :  { %2378 = vmatmul.mubr.msk.f32.gmra.mrb[6].mxu1 %vm417_vm1, %v400_v24 }
  0x86   :  { %2380 = vmatprep.mubr.msk.f32.mxu1 %vm417_vm1, %v402_v25 }
  0x88   :  { %v406_v27 = vpop.permute.xlu0 %405  ;;  %v408_v28 = vpop.permute.xlu1 %407 }
  0x89   :  { %2381 = vmatmul.mubr.msk.f32.gmra.mrb[8].mxu1 %vm417_vm1, %v404_v26 }
  0x8a   :  { %2383 = vmatprep.mubr.msk.f32.mxu1 %vm417_vm1, %v406_v27 }
  0x8c   :  { %v410_v29 = vpop.permute.xlu0 %409  ;;  %v412_v30 = vpop.permute.xlu1 %411 }
  0x8d   :  { %2384 = vmatmul.mubr.msk.f32.gmra.mrb[10].mxu1 %vm417_vm1, %v408_v28  ;;  %v884_v28 = vsel %vm882_vm7, %v2974_v2, 0.0 }
  0x8e   :  { %2386 = vmatprep.mubr.msk.f32.mxu1 %vm417_vm1, %v410_v29 }
  0x90   :  { %v414_v31 = vpop.permute.xlu0 %413  ;;  %v416_v32 = vpop.permute.xlu1 %415 }
  0x91   :  { %2387 = vmatmul.mubr.msk.f32.gmra.mrb[12].mxu1 %vm417_vm1, %v412_v30 }
  0x92   :  { %2389 = vmatprep.mubr.msk.f32.mxu1 %vm417_vm1, %v414_v31 }
  0x94   :  { %v98_v35 = vpop.permute.xlu0 %97  ;;  %v100_v36 = vpop.permute.xlu1 %99 }
  0x95   :  { %2390 = vmatmul.mubr.msk.f32.gmra.mrb[14].mxu1 %vm417_vm1, %v416_v32  ;;  %2342 = vmatprep.mubr.msk.f32.mxu0 %vm129_vm3, %v98_v35 }
  0x96   :  { %2343 = vmatmul.mubr.msk.f32.vlgmr.msra.gmra.mrb[0].mxu0 %vm129_vm3, %v100_v36  ;;  %v2207_v36 = vld [vmem:[%s3797_s8] ss:$0 sm:$0xff] }
  0x98   :  { %v102_v42 = vpop.permute.xlu0 %101  ;;  %v104_v43 = vpop.permute.xlu1 %103 }
  0x99   :  { %2345 = vmatprep.mubr.msk.f32.mxu0 %vm129_vm3, %v102_v42 }
  0x9a   :  { %2346 = vmatmul.mubr.msk.f32.gmra.mrb[2].mxu0 %vm129_vm3, %v104_v43 }
  0x9c   :  { %v106_v52 = vpop.permute.xlu0 %105  ;;  %v108_v53 = vpop.permute.xlu1 %107 }
  0x9d   :  { %2348 = vmatprep.mubr.msk.f32.mxu0 %vm129_vm3, %v106_v52 }
  0x9e   :  { %2349 = vmatmul.mubr.msk.f32.gmra.mrb[4].mxu0 %vm129_vm3, %v108_v53 }
  0xa0   :  { %v110_v54 = vpop.permute.xlu0 %109  ;;  %v112_v55 = vpop.permute.xlu1 %111 }
  0xa1   :  { %2351 = vmatprep.mubr.msk.f32.mxu0 %vm129_vm3, %v110_v54 }
  0xa2   :  { %2352 = vmatmul.mubr.msk.f32.gmra.mrb[6].mxu0 %vm129_vm3, %v112_v55 }
  0xa4   :  { %v114_v56 = vpop.permute.xlu0 %113  ;;  %v116_v57 = vpop.permute.xlu1 %115 }
  0xa5   :  { %2354 = vmatprep.mubr.msk.f32.mxu0 %vm129_vm3, %v114_v56 }
  0xa6   :  { %2355 = vmatmul.mubr.msk.f32.gmra.mrb[8].mxu0 %vm129_vm3, %v116_v57 }
  0xa8   :  { %v118_v58 = vpop.permute.xlu0 %117  ;;  %v120_v59 = vpop.permute.xlu1 %119 }
  0xa9   :  { %2357 = vmatprep.mubr.msk.f32.mxu0 %vm129_vm3, %v118_v58 }
  0xaa   :  { %2358 = vmatmul.mubr.msk.f32.gmra.mrb[10].mxu0 %vm129_vm3, %v120_v59 }
  0xac   :  { %v122_v60 = vpop.permute.xlu0 %121  ;;  %v124_v61 = vpop.permute.xlu1 %123 }
  0xad   :  { %2360 = vmatprep.mubr.msk.f32.mxu0 %vm129_vm3, %v122_v60 }
  0xae   :  { %2361 = vmatmul.mubr.msk.f32.gmra.mrb[12].mxu0 %vm129_vm3, %v124_v61 }
  0xb0   :  { %v126_v62 = vpop.permute.xlu0 %125  ;;  %v128_v63 = vpop.permute.xlu1 %127 }
  0xb1   :  { %2363 = vmatprep.mubr.msk.f32.mxu0 %vm129_vm3, %v126_v62 }
  0xb2   :  { %2364 = vmatmul.mubr.msk.f32.gmra.mrb[14].mxu0 %vm129_vm3, %v128_v63 }
  0xb4   :  { %v835_v6 = vpop.permute.xlu1 %834  ;;  %v837_v27 = vpop.permute.xlu0 %836 }
  0xb5   :  { %v900_v18 = vsel %vm899_vm8, %v883_v17, %v835_v6  ;;  %v901_v29 = vsel %vm899_vm8, %v884_v28, %v837_v27 }
  0xb6   :  { %v916_v20 = vsel %vm417_vm1, %v900_v18, 0.0  ;;  %v917_v30 = vsel %vm417_vm1, %v901_v29, 0.0 }
  0xb7   :  { %932 = vst.msk [vmem:[%s3796_s14] sm:$0xff] %vm129_vm3, %v916_v20  ;;  %933 = vst.msk [vmem:[%s3796_s14 + $0x8] sm:$0xff] %vm129_vm3, %v917_v30 }
  0xb8   :  { %v839_v21 = vpop.permute.xlu1 %838 }
  0xb9   :  { %v902_v22 = vsel %vm899_vm8, %v885_v19, %v839_v21 }
  0xba   :  { %v918_v23 = vsel %vm417_vm1, %v902_v22, 0.0 }
  0xbb   :  { %934 = vst.msk [vmem:[%s3796_s14 + $0x10] sm:$0xff] %vm129_vm3, %v918_v23 }
  0xbc   :  { %v841_v24 = vpop.permute.xlu1 %840 }
  0xbd   :  { %v903_v25 = vsel %vm899_vm8, %v886_v0, %v841_v24 }
  0xbe   :  { %v919_v26 = vsel %vm417_vm1, %v903_v25, 0.0 }
  0xbf   :  { %935 = vst.msk [vmem:[%s3796_s14 + $0x18] sm:$0xff] %vm129_vm3, %v919_v26 }
 0x14c   :  { %v2370_v31 = vpop.f32.mrb[0].mxu1 }
 0x14d   :  { %v520_v32 = vpop.f32.mrb[1].mxu1 }
 0x150   :  { %v2373_v34 = vpop.f32.mrb[2].mxu1 }
 0x151   :  { %v530_v35 = vpop.f32.mrb[3].mxu1 }
 0x154   :  { %v2376_v37 = vpop.f32.mrb[4].mxu1 }
 0x155   :  { %v546_v38 = vadd.f32 %v2376_v37, %v2207_v36  ;;  %v540_v39 = vpop.f32.mrb[5].mxu1 }
 0x156   :  { %v541_v40 = vadd.f32 %v2207_v36, %v540_v39 }
 0x157   :  { %v604_v42 = vmax.f32 %v546_v38, 0.0 }
 0x158   :  { %v603_v43 = vmax.f32 %v541_v40, 0.0  ;;  %v2379_v44 = vpop.f32.mrb[6].mxu1 }
 0x159   :  { %v556_v45 = vadd.f32 %v2379_v44, %v2207_v36  ;;  %v550_v52 = vpop.f32.mrb[7].mxu1  ;;  %v627_v53 = vmul.f32 %v3218_v41, %v604_v42 }
 0x15a   :  { %v551_v54 = vadd.f32 %v2207_v36, %v550_v52  ;;  %v626_v55 = vmul.f32 %v3218_v41, %v603_v43 }
 0x15b   :  { %v606_v56 = vmax.f32 %v556_v45, 0.0  ;;  %v654_v57 = vsel %vm638_vm9, %v627_v53, 0.0 }
 0x15c   :  { %v605_v58 = vmax.f32 %v551_v54, 0.0  ;;  %v2382_v59 = vpop.f32.mrb[8].mxu1  ;;  %655 = vadd.xlane.f32.xlu1 %v654_v57  ;;  %v651_v60 = vsel %vm638_vm9, %v626_v55, 0.0 }
 0x15d   :  { %v566_v61 = vadd.f32 %v2382_v59, %v2207_v36  ;;  %v560_v62 = vpop.f32.mrb[9].mxu1  ;;  %652 = vadd.xlane.f32.xlu0 %v651_v60  ;;  %v629_v63 = vmul.f32 %v3218_v41, %v606_v56 }
 0x15e   :  { %v561_v6 = vadd.f32 %v2207_v36, %v560_v62  ;;  %v628_v21 = vmul.f32 %v3218_v41, %v605_v58 }
 0x15f   :  { %v608_v17 = vmax.f32 %v566_v61, 0.0  ;;  %v660_v18 = vsel %vm638_vm9, %v629_v63, 0.0 }
 0x160   :  { %v607_v19 = vmax.f32 %v561_v6, 0.0  ;;  %v2385_v20 = vpop.f32.mrb[10].mxu1  ;;  %v657_v30 = vsel %vm638_vm9, %v628_v21, 0.0 }
 0x161   :  { %v576_v22 = vadd.f32 %v2385_v20, %v2207_v36  ;;  %v570_v23 = vpop.f32.mrb[11].mxu1  ;;  %661 = vadd.xlane.f32.xlu0 %v660_v18  ;;  %v631_v25 = vmul.f32 %v3218_v41, %v608_v17 }
 0x162   :  { %v571_v0 = vadd.f32 %v2207_v36, %v570_v23  ;;  %v630_v24 = vmul.f32 %v3218_v41, %v607_v19 }
 0x163   :  { %v610_v26 = vmax.f32 %v576_v22, 0.0  ;;  %v666_v37 = vsel %vm638_vm9, %v631_v25, 0.0 }
 0x164   :  { %v609_v27 = vmax.f32 %v571_v0, 0.0  ;;  %v2388_v28 = vpop.f32.mrb[12].mxu1  ;;  %v663_v29 = vsel %vm638_vm9, %v630_v24, 0.0 }
 0x165   :  { %v586_v31 = vadd.f32 %v2388_v28, %v2207_v36  ;;  %v580_v32 = vpop.f32.mrb[13].mxu1  ;;  %664 = vadd.xlane.f32.xlu1 %v663_v29  ;;  %658 = vadd.xlane.f32.xlu0 %v657_v30  ;;  %v633_v42 = vmul.f32 %v3218_v41, %v610_v26 }
 0x166   :  { %v581_v34 = vadd.f32 %v2207_v36, %v580_v32  ;;  %v632_v35 = vmul.f32 %v3218_v41, %v609_v27 }
 0x167   :  { %v612_v38 = vmax.f32 %v586_v31, 0.0  ;;  %v672_v56 = vsel %vm638_vm9, %v633_v42, 0.0 }
 0x168   :  { %v611_v39 = vmax.f32 %v581_v34, 0.0  ;;  %v669_v40 = vsel %vm638_vm9, %v632_v35, 0.0  ;;  %v2391_v43 = vpop.f32.mrb[14].mxu1 }
 0x169   :  { %670 = vadd.xlane.f32.xlu1 %v669_v40  ;;  %667 = vadd.xlane.f32.xlu0 %v666_v37  ;;  %v596_v44 = vadd.f32 %v2391_v43, %v2207_v36  ;;  %v590_v45 = vpop.f32.mrb[15].mxu1  ;;  %v635_v57 = vmul.f32 %v3218_v41, %v612_v38  ;;  %v2344_v63 = vpop.f32.mrb[0].mxu0 }
 0x16a   :  { %v634_v52 = vmul.f32 %v3218_v41, %v611_v39  ;;  %v591_v53 = vadd.f32 %v2207_v36, %v590_v45  ;;  %v232_v17 = vpop.f32.mrb[1].mxu0 }
 0x16b   :  { %v614_v54 = vmax.f32 %v596_v44, 0.0  ;;  %v678_v61 = vsel %vm638_vm9, %v635_v57, 0.0 }
 0x16c   :  { %v675_v55 = vsel %vm638_vm9, %v634_v52, 0.0  ;;  %v613_v58 = vmax.f32 %v591_v53, 0.0 }
 0x16d   :  { %676 = vadd.xlane.f32.xlu1 %v675_v55  ;;  %673 = vadd.xlane.f32.xlu0 %v672_v56  ;;  %v637_v59 = vmul.f32 %v3218_v41, %v614_v54  ;;  %v2347_v21 = vpop.f32.mrb[2].mxu0 }
 0x16e   :  { %v636_v60 = vmul.f32 %v3218_v41, %v613_v58  ;;  %v2189_v41 = vld [vmem:[%s3799_s3] ss:$0 sm:$0xff]  ;;  %v242_v23 = vpop.f32.mrb[3].mxu0 }
 0x16f   :  { %v684_v36 = vsel %vm638_vm9, %v637_v59, 0.0  ;;  %v238_v6 = vadd.f32 %v2344_v63, %v2189_v41  ;;  %v233_v18 = vadd.f32 %v2189_v41, %v232_v17  ;;  %v248_v22 = vadd.f32 %v2347_v21, %v2189_v41 }
 0x170   :  { %v681_v62 = vsel %vm638_vm9, %v636_v60, 0.0  ;;  %v243_v0 = vadd.f32 %v2189_v41, %v242_v23  ;;  %v3279_v23 = vld [vmem:[%s3800_s4 + $0x8] sm:$0xff] }
 0x171   :  { %679 = vadd.xlane.f32.xlu0 %v678_v61  ;;  %v312_v19 = vmul.f32 %v238_v6, %v3150_v46  ;;  %v311_v20 = vmul.f32 %v233_v18, %v3150_v46  ;;  %v314_v24 = vmul.f32 %v248_v22, %v3150_v46  ;;  %v2350_v26 = vpop.f32.mrb[4].mxu0  ;;  %v3274_v22 = vld [vmem:[%s3800_s4] sm:$0xff] }
 0x172   :  { %v313_v25 = vmul.f32 %v243_v0, %v3150_v46  ;;  %v258_v27 = vadd.f32 %v2350_v26, %v2189_v41  ;;  %v252_v28 = vpop.f32.mrb[5].mxu0  ;;  %v3294_v0 = vld [vmem:[%s3801_s5] ss:$0 sm:$0xff]  ;;  %v843_v26 = vpop.permute.xlu0 %842  ;;  %s3465_s5 = smov 4  }
 0x173   :  { %328 = vst [vmem:[#allocation2 + $0x8] sm:$0xff] %v312_v19  ;;  %327 = vst [vmem:[#allocation2] sm:$0xff] %v311_v20  ;;  %v253_v29 = vadd.f32 %v2189_v41, %v252_v28 }
 0x174   :  { %330 = vst [vmem:[#allocation2 + $0x18] sm:$0xff] %v314_v24  ;;  %329 = vst [vmem:[#allocation2 + $0x10] sm:$0xff] %v313_v25  ;;  %v316_v30 = vmul.f32 %v258_v27, %v3150_v46  ;;  %v3299_v24 = vld [vmem:[%s3802_s6] ss:$0 sm:$0xff]  ;;  %v845_v25 = vpop.permute.xlu1 %844 }
 0x175   :  { %685 = vadd.xlane.f32.xlu0 %v684_v36  ;;  %v315_v31 = vmul.f32 %v253_v29, %v3150_v46  ;;  %v2353_v32 = vpop.f32.mrb[6].mxu0 }
 0x176   :  { %332 = vst [vmem:[#allocation2 + $0x28] sm:$0xff] %v316_v30  ;;  %v262_v34 = vpop.f32.mrb[7].mxu0  ;;  %v268_v35 = vadd.f32 %v2353_v32, %v2189_v41  ;;  %v3303_v28 = vpop.permute.xlu0 %846 }
 0x177   :  { %331 = vst [vmem:[#allocation2 + $0x20] sm:$0xff] %v315_v31  ;;  %v263_v37 = vadd.f32 %v2189_v41, %v262_v34  ;;  %v3316_v34 = vstv %s3803_s11 }
 0x178   :  { %v318_v38 = vmul.f32 %v268_v35, %v3150_v46  ;;  %v3301_v27 = vpop.permute.xlu1 %848 }
 0x179   :  { %v317_v39 = vmul.f32 %v263_v37, %v3150_v46  ;;  %v2356_v40 = vpop.f32.mrb[8].mxu0 }
 0x17a   :  { %v272_v42 = vpop.f32.mrb[9].mxu0  ;;  %334 = vst [vmem:[#allocation2 + $0x38] sm:$0xff] %v318_v38  ;;  %v278_v43 = vadd.f32 %v2356_v40, %v2189_v41  ;;  %v3307_v30 = vpop.permute.xlu0 %850 }
 0x17b   :  { %333 = vst [vmem:[#allocation2 + $0x30] sm:$0xff] %v317_v39  ;;  %v273_v44 = vadd.f32 %v2189_v41, %v272_v42 }
 0x17c   :  { %v320_v45 = vmul.f32 %v278_v43, %v3150_v46  ;;  %v3305_v29 = vpop.permute.xlu1 %852 }
 0x17d   :  { %v319_v52 = vmul.f32 %v273_v44, %v3150_v46  ;;  %v2359_v53 = vpop.f32.mrb[10].mxu0 }
 0x17e   :  { %860 = vrot.lane.b32.xlu1 %v3052_v14, %s2866_s17  ;;  %v282_v54 = vpop.f32.mrb[11].mxu0  ;;  %336 = vst [vmem:[#allocation2 + $0x48] sm:$0xff] %v320_v45  ;;  %v288_v55 = vadd.f32 %v2359_v53, %v2189_v41  ;;  %v3311_v32 = vpop.permute.xlu0 %854 }
 0x17f   :  { %335 = vst [vmem:[#allocation2 + $0x40] sm:$0xff] %v319_v52  ;;  %v283_v56 = vadd.f32 %v2189_v41, %v282_v54 }
 0x180   :  { %v322_v57 = vmul.f32 %v288_v55, %v3150_v46  ;;  %v3309_v31 = vpop.permute.xlu1 %856 }
 0x181   :  { %v321_v58 = vmul.f32 %v283_v56, %v3150_v46  ;;  %v2362_v59 = vpop.f32.mrb[12].mxu0 }
 0x182   :  { %v292_v60 = vpop.f32.mrb[13].mxu0  ;;  %338 = vst [vmem:[#allocation2 + $0x58] sm:$0xff] %v322_v57  ;;  %v298_v61 = vadd.f32 %v2362_v59, %v2189_v41 }
 0x183   :  { %337 = vst [vmem:[#allocation2 + $0x50] sm:$0xff] %v321_v58 }
 0x184   :  { %v324_v36 = vmul.f32 %v298_v61, %v3150_v46 }
 0x185   :  { %v2365_v6 = vpop.f32.mrb[14].mxu0 }
 0x186   :  { %v302_v17 = vpop.f32.mrb[15].mxu0  ;;  %340 = vst [vmem:[#allocation2 + $0x68] sm:$0xff] %v324_v36  ;;  %v308_v18 = vadd.f32 %v2365_v6, %v2189_v41 }
 0x187   :  { %v303_v19 = vadd.f32 %v2189_v41, %v302_v17 }
 0x188   :  { %v326_v20 = vmul.f32 %v308_v18, %v3150_v46  ;;  %v888_v18 = vsel %vm882_vm7, %v2993_v5, 0.0 }
 0x189   :  { %v325_v21 = vmul.f32 %v303_v19, %v3150_v46  ;;  %v3330_v19 = vstv %s3804_s12 }
 0x18a   :  { %342 = vst [vmem:[#allocation2 + $0x78] sm:$0xff] %v326_v20 }
 0x18b   :  { %858 = vrot.lane.b32.xlu0 %v3047_v13, %s2866_s17  ;;  %341 = vst [vmem:[#allocation2 + $0x70] sm:$0xff] %v325_v21 }
 0x18f   :  { %862 = vrot.lane.b32.xlu0 %v3061_v15, %s2866_s17 }
 0x1a2   :  { %682 = vadd.xlane.f32.xlu1 %v681_v62  ;;  %v293_v62 = vadd.f32 %v2189_v41, %v292_v60  ;;  %v3284_v41 = vld [vmem:[%s3800_s4 + $0x10] sm:$0xff] }
 0x1a4   :  { %v323_v63 = vmul.f32 %v293_v62, %v3150_v46  ;;  %v3289_v46 = vld [vmem:[%s3800_s4 + $0x18] sm:$0xff] }
 0x1a6   :  { %339 = vst [vmem:[#allocation2 + $0x60] sm:$0xff] %v323_v63 }
 0x1b3   :  { %864 = vrot.lane.b32.xlu1 %v3066_v16, %s2866_s17 }
 0x1e9   :  { %v656_v35 = vpop.xlane.xlu1 %655 }
 0x1ea   :  { %v693_v37 = vadd.f32 %v3316_v34, %v656_v35  ;;  %v653_v38 = vpop.xlane.xlu0 %652 }
 0x1eb   :  { %v692_v39 = vadd.f32 %v3316_v34, %v653_v38 }
 0x1ec   :  { %v709_v40 = vmul.f32 0.5, %v693_v37 }
 0x1ed   :  { %v708_v42 = vmul.f32 0.5, %v692_v39 }
 0x1ee   :  { %2692 = vtanh.f32 %v709_v40  ;;  %v662_v43 = vpop.xlane.xlu0 %661  ;;  %v887_v40 = vsel %vm882_vm7, %v2988_v4, 0.0 }
 0x1ef   :  { %2694 = vtanh.f32 %v708_v42  ;;  %v695_v44 = vadd.f32 %v3316_v34, %v662_v43 }
 0x1f1   :  { %v711_v45 = vmul.f32 0.5, %v695_v44 }
 0x1f2   :  { %v665_v52 = vpop.xlane.xlu1 %664  ;;  %v659_v53 = vpop.xlane.xlu0 %658 }
 0x1f3   :  { %2696 = vtanh.f32 %v711_v45  ;;  %v696_v54 = vadd.f32 %v3316_v34, %v665_v52  ;;  %v694_v55 = vadd.f32 %v3316_v34, %v659_v53  ;;  %v905_v52 = vsel %vm899_vm8, %v888_v18, %v845_v25 }
 0x1f5   :  { %v712_v56 = vmul.f32 0.5, %v696_v54  ;;  %v710_v57 = vmul.f32 0.5, %v694_v55 }
 0x1f6   :  { %v671_v58 = vpop.xlane.xlu1 %670  ;;  %v668_v59 = vpop.xlane.xlu0 %667 }
 0x1f7   :  { %2698 = vtanh.f32 %v712_v56  ;;  %v698_v60 = vadd.f32 %v3316_v34, %v671_v58  ;;  %v697_v61 = vadd.f32 %v3316_v34, %v668_v59  ;;  %v904_v56 = vsel %vm899_vm8, %v887_v40, %v843_v26 }
 0x1f8   :  { %v2693_v62 = vpop.eup %2692  ;;  %2700 = vtanh.f32 %v710_v57  ;;  %v890_v59 = vsel %vm882_vm7, %v3010_v8, 0.0 }
 0x1f9   :  { %v2695_v36 = vpop.eup %2694  ;;  %v741_v63 = vmul.f32 0.5, %v2693_v62  ;;  %v714_v6 = vmul.f32 0.5, %v698_v60  ;;  %v713_v17 = vmul.f32 0.5, %v697_v61 }
 0x1fa   :  { %v740_v20 = vmul.f32 0.5, %v2695_v36  ;;  %v677_v21 = vpop.xlane.xlu1 %676  ;;  %v674_v35 = vpop.xlane.xlu0 %673 }
 0x1fb   :  { %v757_v37 = vadd.f32 0.5, %v741_v63  ;;  %2702 = vtanh.f32 %v714_v6  ;;  %v700_v38 = vadd.f32 %v3316_v34, %v677_v21  ;;  %v699_v39 = vadd.f32 %v3316_v34, %v674_v35 }
 0x1fc   :  { %v756_v42 = vadd.f32 0.5, %v740_v20  ;;  %2704 = vtanh.f32 %v713_v17  ;;  %v907_v63 = vsel %vm899_vm8, %v890_v59, %v3301_v27  ;;  %v891_v17 = vsel %vm882_vm7, %v3019_v9, 0.0 }
 0x1fd   :  { %v2697_v5 = vpop.eup %2696  ;;  %v774_v43 = vmul.f32 %v3330_v19, %v757_v37  ;;  %v716_v44 = vmul.f32 0.5, %v700_v38  ;;  %v715_v45 = vmul.f32 0.5, %v699_v39  ;;  %v889_v37 = vsel %vm882_vm7, %v3005_v7, 0.0 }
 0x1fe   :  { %v773_v53 = vmul.f32 %v3330_v19, %v756_v42  ;;  %v743_v54 = vmul.f32 0.5, %v2697_v5  ;;  %v680_v55 = vpop.xlane.xlu0 %679  ;;  %v908_v9 = vsel %vm899_vm8, %v891_v17, %v3307_v30  ;;  %v893_v7 = vsel %vm882_vm7, %v3033_v11, 0.0  ;;  %v861_v17 = vpop.permute.xlu1 %860 }
 0x1ff   :  { %v921_v57 = vsel %vm417_vm1, %v905_v52, %v774_v43  ;;  %2706 = vtanh.f32 %v716_v44  ;;  %v701_v58 = vadd.f32 %v3316_v34, %v680_v55  ;;  %v906_v43 = vsel %vm899_vm8, %v889_v37, %v3303_v28 }
 0x200   :  { %937 = vst.msk [vmem:[%s3796_s14 + $0x28] sm:$0xff] %vm129_vm3, %v921_v57  ;;  %v920_v25 = vsel %vm417_vm1, %v904_v56, %v773_v53  ;;  %v759_v60 = vadd.f32 0.5, %v743_v54  ;;  %2708 = vtanh.f32 %v715_v45  ;;  %v892_v53 = vsel %vm882_vm7, %v3024_v10, 0.0 }
 0x201   :  { %v2699_v61 = vpop.eup %2698  ;;  %936 = vst.msk [vmem:[%s3796_s14 + $0x20] sm:$0xff] %vm129_vm3, %v920_v25  ;;  %v717_v26 = vmul.f32 0.5, %v701_v58  ;;  %v895_v10 = vsel %vm882_vm7, %v3047_v13, 0.0  ;;  %v910_v57 = vsel %vm899_vm8, %v893_v7, %v3311_v32  ;;  %v909_v25 = vsel %vm899_vm8, %v892_v53, %v3305_v29 }
 0x202   :  { %v2701_v62 = vpop.eup %2700  ;;  %v776_v36 = vmul.f32 %v3330_v19, %v759_v60  ;;  %v744_v8 = vmul.f32 0.5, %v2699_v61  ;;  %v686_v21 = vpop.xlane.xlu0 %685  ;;  %v898_v7 = vsel %vm882_vm7, %v3066_v16, 0.0 }
 0x203   :  { %v742_v6 = vmul.f32 0.5, %v2701_v62  ;;  %2710 = vtanh.f32 %v717_v26  ;;  %v894_v62 = vsel %vm882_vm7, %v3038_v12, 0.0 }
 0x204   :  { %v923_v18 = vsel %vm417_vm1, %v907_v63, %v776_v36  ;;  %v760_v20 = vadd.f32 0.5, %v744_v8  ;;  %v911_v63 = vsel %vm899_vm8, %v894_v62, %v3309_v31 }
 0x205   :  { %v2703_v35 = vpop.eup %2702  ;;  %939 = vst.msk [vmem:[%s3796_s14 + $0x38] sm:$0xff] %vm129_vm3, %v923_v18  ;;  %v758_v38 = vadd.f32 0.5, %v742_v6  ;;  %v896_v6 = vsel %vm882_vm7, %v3052_v14, 0.0 }
 0x206   :  { %v2705_v27 = vpop.eup %2704  ;;  %v777_v39 = vmul.f32 %v3330_v19, %v760_v20  ;;  %v746_v40 = vmul.f32 0.5, %v2703_v35  ;;  %v859_v56 = vpop.permute.xlu0 %858  ;;  %v913_v14 = vsel %vm899_vm8, %v896_v6, %v861_v17 }
 0x207   :  { %v775_v42 = vmul.f32 %v3330_v19, %v758_v38  ;;  %v745_v5 = vmul.f32 0.5, %v2705_v27  ;;  %v912_v36 = vsel %vm899_vm8, %v895_v10, %v859_v56  ;;  %v703_v38 = vadd.f32 %v3316_v34, %v686_v21 }
 0x208   :  { %v924_v44 = vsel %vm417_vm1, %v908_v9, %v777_v39  ;;  %v762_v45 = vadd.f32 0.5, %v746_v40 }
 0x209   :  { %v2707_v52 = vpop.eup %2706  ;;  %940 = vst.msk [vmem:[%s3796_s14 + $0x40] sm:$0xff] %vm129_vm3, %v924_v44  ;;  %v922_v30 = vsel %vm417_vm1, %v906_v43, %v775_v42  ;;  %v761_v54 = vadd.f32 0.5, %v745_v5  ;;  %v719_v27 = vmul.f32 0.5, %v703_v38 }
 0x20a   :  { %v2709_v55 = vpop.eup %2708  ;;  %938 = vst.msk [vmem:[%s3796_s14 + $0x30] sm:$0xff] %vm129_vm3, %v922_v30  ;;  %v779_v11 = vmul.f32 %v3330_v19, %v762_v45  ;;  %v748_v28 = vmul.f32 0.5, %v2707_v52 }
 0x20b   :  { %v778_v58 = vmul.f32 %v3330_v19, %v761_v54  ;;  %v747_v59 = vmul.f32 0.5, %v2709_v55  ;;  %2712 = vtanh.f32 %v719_v27  ;;  %v863_v54 = vpop.permute.xlu0 %862 }
 0x20c   :  { %v926_v60 = vsel %vm417_vm1, %v910_v57, %v779_v11  ;;  %v764_v61 = vadd.f32 0.5, %v748_v28 }
 0x20d   :  { %v2711_v26 = vpop.eup %2710  ;;  %942 = vst.msk [vmem:[%s3796_s14 + $0x50] sm:$0xff] %vm129_vm3, %v926_v60  ;;  %v925_v13 = vsel %vm417_vm1, %v909_v25, %v778_v58  ;;  %v763_v32 = vadd.f32 0.5, %v747_v59 }
 0x20e   :  { %941 = vst.msk [vmem:[%s3796_s14 + $0x48] sm:$0xff] %vm129_vm3, %v925_v13  ;;  %v781_v29 = vmul.f32 %v3330_v19, %v764_v61  ;;  %v749_v8 = vmul.f32 0.5, %v2711_v26 }
 0x20f   :  { %v780_v12 = vmul.f32 %v3330_v19, %v763_v32 }
 0x210   :  { %v765_v18 = vadd.f32 0.5, %v749_v8  ;;  %v928_v20 = vsel %vm417_vm1, %v912_v36, %v781_v29 }
 0x211   :  { %v927_v35 = vsel %vm417_vm1, %v911_v63, %v780_v12  ;;  %944 = vst.msk [vmem:[%s3796_s14 + $0x60] sm:$0xff] %vm129_vm3, %v928_v20 }
 0x212   :  { %943 = vst.msk [vmem:[%s3796_s14 + $0x58] sm:$0xff] %vm129_vm3, %v927_v35  ;;  %v782_v31 = vmul.f32 %v3330_v19, %v765_v18 }
 0x214   :  { %v929_v37 = vsel %vm417_vm1, %v913_v14, %v782_v31 }
 0x215   :  { %945 = vst.msk [vmem:[%s3796_s14 + $0x68] sm:$0xff] %vm129_vm3, %v929_v37  ;;  %v2713_v39 = vpop.eup %2712 }
 0x216   :  { %v751_v40 = vmul.f32 0.5, %v2713_v39 }
 0x218   :  { %v767_v9 = vadd.f32 0.5, %v751_v40 }
 0x21a   :  { %v784_v43 = vmul.f32 %v3330_v19, %v767_v9 }
 0x22f   :  { %v683_v42 = vpop.xlane.xlu1 %682 }
 0x230   :  { %v702_v5 = vadd.f32 %v3316_v34, %v683_v42  ;;  %v897_v34 = vsel %vm882_vm7, %v3061_v15, 0.0  ;;  %v3461_v15 = vmov 1.0  }
 0x231   :  { %v914_v16 = vsel %vm899_vm8, %v897_v34, %v863_v54 }
 0x232   :  { %v718_v44 = vmul.f32 0.5, %v702_v5 }
 0x233   :  { %v865_v21 = vpop.permute.xlu1 %864 }
 0x234   :  { %2714 = vtanh.f32 %v718_v44  ;;  %v915_v45 = vsel %vm899_vm8, %v898_v7, %v865_v21 }
 0x235   :  { %v931_v52 = vsel %vm417_vm1, %v915_v45, %v784_v43 }
 0x236   :  { %947 = vst.msk [vmem:[%s3796_s14 + $0x78] sm:$0xff] %vm129_vm3, %v931_v52 }
 0x23e   :  { %v2715_v53 = vpop.eup %2714 }
 0x23f   :  { %v750_v30 = vmul.f32 0.5, %v2715_v53 }
 0x241   :  { %v766_v55 = vadd.f32 0.5, %v750_v30 }
 0x243   :  { %v783_v11 = vmul.f32 %v3330_v19, %v766_v55  ;;  %v3463_v19 = vmov 1.0  }
 0x245   :  { %v930_v28 = vsel %vm417_vm1, %v914_v16, %v783_v11 }
 0x246   :  { %946 = vst.msk [vmem:[%s3796_s14 + $0x70] sm:$0xff] %vm129_vm3, %v930_v28 }
 0x247 LB: > { %v3805_v10 = vmov %v2810_v3  ;;  %v3806_v56 = vmov %v2814_v1  ;;  %v3807_v57 = vmov %v2822_v4  ;;  %v3486_v3 = vpack.c.bf16 %v3159_v49, %v3156_v48  ;;  %s2869_s6 = smov 32   ;;  %s985_s11 = scvt.s32.f32 %s2834_s5  ;;  %s2834_s5 = sphi %s3465_s5, %s975_s5   ;;  %v2830_v19 = vphi %v3463_v19, %v3816_v19   ;;  %v2826_v15 = vphi %v3461_v15, %v3815_v15   ;;  %v2822_v4 = vphi %v2988_v4, %v3814_v4   ;;  %v2818_v2 = vphi %v2974_v2, %v3813_v2   ;;  %v2814_v1 = vphi %v2965_v1, %v3812_v1   ;;  %v2810_v3 = vphi %v2979_v3, %v3811_v3  }
 0x248   : > { %v2868_v59 = vmov 0.0|0.0   ;;  %1013 = vrot.lane.b32.xlu0 %v2830_v19, %s2869_s6  ;;  %v3494_v1 = vpack.c.bf16 %v3166_v51, %v3162_v50  ;;  %s2227_s12 = sadd.s32 4294967293, %s2834_s5  ;;  %vm2870_vm10 = vmmov 0   ;;  %v2871_v4 = vmov 0.0   ;;  %s2873_s22 = smov 64  }
 0x249   : > { %v3808_v58 = vmov %v3486_v3  ;;  %2502 = vmatprep.subr.bf16.mxu0 %v2868_v59  ;;  %2508 = vmatprep.subr.bf16.mxu1 %v2868_v59  ;;  %s3501_s15 = sshll.u32 %s2227_s12, 3  ;;  %v2872_v60 = vmov 0   ;;  %s988_s7 = smul.f32 0.083333336, %s985_s11  ;;  %vm1015_vm11 = vcmask 261120   ;;  %vm1537_vm12 = vcmask 15368  }
 0x24a   : > { %2504 = vmatpush3.bf16.msra.mxu0 %v3808_v58  ;;  %v3809_v25 = vmov %v3494_v1  ;;  %2400 = vmatprep.mubr.msk.f32.mxu0 %vm2870_vm10, %v2871_v4  ;;  %s991_s19 = scalar_lea.vmem %s3790_s0, %s3501_s15  ;;  %s1009_s21 = scalar_lea.vmem [#allocation2], %s3501_s15 }
 0x24b   : > { %2505 = vmatprep.subr.bf16.mxu0 %v2868_v59  ;;  %2716 = vset.pattern.permute.xlu0 %v2872_v60  ;;  %v992_v61 = vld [vmem:[%s991_s19] sm:$0xff]  ;;  %v3512_v26 = vstv %s988_s7  ;;  %s995_s20 = ssub.f32 1.0, %s988_s7  ;;  %s3539_s8 = sshll.u32 %s2834_s5, 3 }
 0x24c   : > { %2510 = vmatpush3.bf16.msra.mxu1 %v3808_v58  ;;  %2411 = vmatprep.mubr.msk.f32.mxu1 %vm2870_vm10, %v2871_v4  ;;  %v994_v62 = vmul.f32 %v3512_v26, %v992_v61  ;;  %v1010_v17 = vld [vmem:[%s1009_s21] sm:$0xff]  ;;  %s3545_s17 = scalar_lea.vmem %s3790_s0, %s3539_s8  ;;  %s3560_s23 = scalar_lea.vmem [#allocation2], %s3539_s8 }
 0x24d   : > { %2511 = vmatprep.subr.bf16.mxu1 %v2868_v59  ;;  %2717 = vset.pattern.permute.xlu1 %v2872_v60  ;;  %v3516_v13 = vstv %s995_s20  ;;  %v2231_v43 = vld [vmem:[%s3545_s17 - $0x10] sm:$0xff]  ;;  %s983_s26 = scalar_lea.vmem %s3796_s14, %s3539_s8  ;;  %s2874_s29 = smov 126  }
 0x24e   : > { %2507 = vmatpush3.bf16.msra.mxu0 %v3809_v25  ;;  %v997_v32 = vmul.f32 %v2818_v2, %v3516_v13  ;;  %v1005_v2 = vshrl.u32 %v51_v33, 7  ;;  %v1114_v7 = vmul.f32 %v3806_v56, %v3516_v13  ;;  %v1113_v44 = vmul.f32 %v2231_v43, %v3512_v26  ;;  %v2233_v54 = vld [vmem:[%s3560_s23 - $0x10] sm:$0xff]  ;;  %984 = vst.msk [vmem:[%s983_s26] sm:$0xff] %vm882_vm7, %v3807_v57  ;;  %s975_s5 = sadd.s32 1, %s2834_s5  }
 0x24f   : > { %2514 = vmatprep.subr.bf16.mxu0 %v2868_v59  ;;  %p972_p0 = scmp.ge.s32.totalorder %s975_s5, 12  }
 0x250   : > { %2513 = vmatpush3.bf16.msra.mxu1 %v3809_v25  ;;  %v998_v36 = vadd.f32 %v997_v32, %v994_v62  ;;  %v1006_v8 = vsub.s32 0, %v1005_v2  ;;  %v1115_v21 = vadd.f32 %v1114_v7, %v1113_v44  ;;  %v1226_v2 = vmul.f32 %v3805_v10, %v3516_v13  ;;  %v1334_v44 = vld [vmem:[%s3545_s17] sm:$0xff]  ;;  %s3661_s12 = smov (%p972_p0), 12  }
 0x251   : > { %2520 = vmatprep.subr.bf16.mxu1 %v2868_v59 }
 0x252   : > { %1001 = vperm.xlu0 %2716, %v998_v36   ;;  %v3530_v12 = vrot.slane %v3153_v47, %v1006_v8  ;;  %v2236_v36 = vld [vmem:[%s3545_s17 - $0x8] sm:$0xff] }
 0x2ba   : > { %v1014_v29 = vpop.permute.xlu0 %1013 }
 0x2bb   : > { %2401 = vmatmul.mubr.msk.f32.vlgmr.msra.gmra.mrb[0].mxu0 %vm1015_vm11, %v1014_v29  ;;  %v1225_v29 = vmul.f32 %v2236_v36, %v3512_v26 }
 0x2bc   : > { %2516 = vmatpush3.bf16.msra.mxu0 %v3808_v58  ;;  %2422 = vmatprep.mubr.msk.f32.mxu0 %vm2870_vm10, %v2871_v4 }
 0x2bd   : > { %2517 = vmatprep.subr.bf16.mxu0 %v2868_v59 }
 0x2c0   : > { %2519 = vmatpush3.bf16.msra.mxu0 %v3809_v25 }
 0x2c1   : > { %2526 = vmatprep.subr.bf16.mxu0 %v2868_v59 }
 0x2d1   : > { %v1002_v63 = vpop.permute.xlu0 %1001 }
 0x2d2   : > { %v1008_v6 = vmul.f32 %v3530_v12, %v1002_v63  ;;  %v1227_v63 = vadd.f32 %v1226_v2, %v1225_v29  ;;  %v3591_v29 = vpack.c.bf16 %v3279_v23, %v3274_v22  ;;  %v3596_v2 = vpack.c.bf16 %v3289_v46, %v3284_v41 }
 0x2d4   : > { %v1011_v18 = vadd.f32 %v1010_v17, %v1008_v6 }
 0x38e   : > { %v1084_v20 = vpop.f32.mrb[0].mxu0 }
 0x38f   : > { %v1088_v35 = vadd.f32 %v1084_v20, %v1011_v18  ;;  %v2402_v31 = vpop.f32.mrb[1].mxu0 }
 0x390   : > { %v2238_v31 = vld [vmem:[%s3560_s23 - $0x8] sm:$0xff] }
 0x391   : > { %2718 = vtanh.f32 %v1088_v35 }
 0x39b   : > { %v2719_v14 = vpop.eup %2718 }
 0x39c   : > { %1094 = vrot.lane.b32.xlu1 %v2719_v14, %s2873_s22  ;;  %v1090_v37 = vmul.f32 0.5, %v2719_v14 }
 0x39e   : > { %v1091_v38 = vadd.f32 0.5, %v1090_v37 }
 0x3a0   : > { %v1092_v40 = vmul.f32 %v2826_v15, %v1091_v38 }
 0x40e   : > { %v1095_v27 = vpop.permute.xlu1 %1094 }
 0x40f   : > { %v1097_v39 = vmul.f32 %v1095_v27, %v1091_v38 }
 0x411   : > { %1099 = vrot.lane.b32.xlu1 %v1097_v39, %s2869_s6 }
 0x483   : > { %v1100_v9 = vpop.permute.xlu1 %1099 }
 0x484   : > { %v1102_v42 = vadd.f32 %v1100_v9, %v1092_v40 }
 0x486   : > { %2720 = vtanh.f32 %v1102_v42 }
 0x490   : > { %v2721_v5 = vpop.eup %2720 }
 0x491   : > { %1105 = vrot.lane.b32.xlu1 %v2721_v5, %s2873_s22 }
 0x495   : > { %1118 = vperm.xlu1 %2717, %v1115_v21   ;;  %v1335_v21 = vmul.f32 %v1334_v44, %v3512_v26 }
 0x503   : > { %v1106_v45 = vpop.permute.xlu1 %1105 }
 0x504   : > { %v1108_v52 = vmul.f32 %v1106_v45, %v1091_v38  ;;  %v1336_v45 = vmul.f32 %v3807_v57, %v3516_v13 }
 0x506   : > { %1126 = vrot.lane.b32.xlu0 %v1108_v52, %s2869_s6 }
 0x514   : > { %v1119_v30 = vpop.permute.xlu1 %1118 }
 0x515   : > { %v1121_v34 = vmul.f32 %v1119_v30, %v3530_v12 }
 0x517   : > { %v1124_v55 = vadd.f32 %v2233_v54, %v1121_v34 }
 0x578   : > { %v1127_v53 = vpop.permute.xlu0 %1126 }
 0x579   : > { %2412 = vmatmul.mubr.msk.f32.vlgmr.msra.gmra.mrb[0].mxu1 %vm1015_vm11, %v1127_v53  ;;  %v1337_v53 = vadd.f32 %v1336_v45, %v1335_v21 }
 0x57a   : > { %2522 = vmatpush3.bf16.msra.mxu1 %v3808_v58  ;;  %2433 = vmatprep.mubr.msk.f32.mxu1 %vm2870_vm10, %v2871_v4 }
 0x57b   : > { %2523 = vmatprep.subr.bf16.mxu1 %v2868_v59 }
 0x57e   : > { %2525 = vmatpush3.bf16.msra.mxu1 %v3809_v25 }
 0x64c   : > { %v1196_v16 = vpop.f32.mrb[0].mxu1 }
 0x64d   : > { %v1200_v11 = vadd.f32 %v1196_v16, %v1124_v55  ;;  %v2413_v28 = vpop.f32.mrb[1].mxu1 }
 0x64f   : > { %2722 = vtanh.f32 %v1200_v11  ;;  %v1345_v11 = vld [vmem:[%s3560_s23] sm:$0xff] }
 0x659   : > { %v2723_v15 = vpop.eup %2722 }
 0x65a   : > { %1206 = vrot.lane.b32.xlu0 %v2723_v15, %s2873_s22  ;;  %v1202_v19 = vmul.f32 0.5, %v2723_v15 }
 0x65c   : > { %v1203_v3 = vadd.f32 0.5, %v1202_v19 }
 0x65e   : > { %v1204_v61 = vmul.f32 %v1203_v3, %v1102_v42 }
 0x6cc   : > { %v1207_v1 = vpop.permute.xlu0 %1206 }
 0x6cd   : > { %v1209_v60 = vmul.f32 %v1207_v1, %v1203_v3 }
 0x6cf   : > { %1211 = vrot.lane.b32.xlu1 %v1209_v60, %s2869_s6 }
 0x741   : > { %v1212_v62 = vpop.permute.xlu1 %1211 }
 0x742   : > { %v1214_v32 = vadd.f32 %v1212_v62, %v1204_v61 }
 0x744   : > { %2724 = vtanh.f32 %v1214_v32 }
 0x74e   : > { %v2725_v8 = vpop.eup %2724 }
 0x74f   : > { %1217 = vrot.lane.b32.xlu0 %v2725_v8, %s2873_s22  ;;  %v3810_v8 = vmov %v3596_v2  ;;  %v3813_v2 = vmov %v3806_v56 }
 0x753   : > { %1230 = vperm.xlu0 %2716, %v1227_v63  }
 0x7c1   : > { %v1218_v6 = vpop.permute.xlu0 %1217 }
 0x7c2   : > { %v1220_v17 = vmul.f32 %v1218_v6, %v1203_v3 }
 0x7c4   : > { %1238 = vrot.lane.b32.xlu1 %v1220_v17, %s2869_s6 }
 0x7d2   : > { %v1231_v20 = vpop.permute.xlu0 %1230 }
 0x7d3   : > { %v1233_v35 = vmul.f32 %v1231_v20, %v3530_v12 }
 0x7d5   : > { %v1236_v14 = vadd.f32 %v2238_v31, %v1233_v35 }
 0x836   : > { %v1239_v18 = vpop.permute.xlu1 %1238 }
 0x837   : > { %2423 = vmatmul.mubr.msk.f32.vlgmr.msra.gmra.mrb[2].mxu0 %vm1015_vm11, %v1239_v18 }
 0x838   : > { %2444 = vmatprep.mubr.msk.f32.mxu0 %vm2870_vm10, %v2871_v4  ;;  %2528 = vmatpush3.bf16.msra.mxu0 %v3591_v29 }
 0x839   : > { %2529 = vmatprep.subr.bf16.mxu0 %v2868_v59 }
 0x83c   : > { %2531 = vmatpush3.bf16.msra.mxu0 %v3810_v8 }
 0x90a   : > { %v1308_v37 = vpop.f32.mrb[2].mxu0 }
 0x90b   : > { %v1312_v38 = vadd.f32 %v1308_v37, %v1236_v14  ;;  %v2424_v27 = vpop.f32.mrb[3].mxu0 }
 0x90d   : > { %2726 = vtanh.f32 %v1312_v38  ;;  %v1535_v38 = vstv %s3793_s10 }
 0x917   : > { %v2727_v39 = vpop.eup %2726 }
 0x918   : > { %1318 = vrot.lane.b32.xlu1 %v2727_v39, %s2873_s22  ;;  %v1314_v40 = vmul.f32 0.5, %v2727_v39 }
 0x91a   : > { %v1315_v9 = vadd.f32 0.5, %v1314_v40 }
 0x91c   : > { %v1316_v4 = vmul.f32 %v1315_v9, %v1214_v32 }
 0x98a   : > { %v1319_v42 = vpop.permute.xlu1 %1318 }
 0x98b   : > { %v1321_v5 = vmul.f32 %v1319_v42, %v1315_v9 }
 0x98d   : > { %1323 = vrot.lane.b32.xlu0 %v1321_v5, %s2869_s6  ;;  %v1548_v5 = vstv %s3794_s13 }
 0x9ff   : > { %v1324_v43 = vpop.permute.xlu0 %1323 }
 0xa00   : > { %v1326_v7 = vadd.f32 %v1324_v43, %v1316_v4 }
 0xa02   : > { %2728 = vtanh.f32 %v1326_v7 }
 0xa0c   : > { %v2729_v52 = vpop.eup %2728 }
 0xa0d   : > { %1329 = vrot.lane.b32.xlu1 %v2729_v52, %s2873_s22 }
 0xa11   : > { %1340 = vperm.xlu1 %2717, %v1337_v53  }
 0xa7f   : > { %v1330_v30 = vpop.permute.xlu1 %1329 }
 0xa80   : > { %v1332_v34 = vmul.f32 %v1330_v30, %v1315_v9 }
 0xa82   : > { %1348 = vrot.lane.b32.xlu0 %v1332_v34, %s2869_s6 }
 0xa90   : > { %v1341_v55 = vpop.permute.xlu1 %1340 }
 0xa91   : > { %v1343_v16 = vmul.f32 %v1341_v55, %v3530_v12 }
 0xa93   : > { %v1346_v26 = vadd.f32 %v1345_v11, %v1343_v16 }
 0xaf4   : > { %v1349_v54 = vpop.permute.xlu0 %1348 }
 0xaf5   : > { %2434 = vmatmul.mubr.msk.f32.vlgmr.msra.gmra.mrb[2].mxu1 %vm1015_vm11, %v1349_v54 }
 0xbc8   : > { %v1418_v28 = vpop.f32.mrb[2].mxu1 }
 0xbc9   : > { %v1422_v15 = vadd.f32 %v1418_v28, %v1346_v26  ;;  %v2435_v13 = vpop.f32.mrb[3].mxu1 }
 0xbcb   : > { %2730 = vtanh.f32 %v1422_v15 }
 0xbd5   : > { %v2731_v19 = vpop.eup %2730 }
 0xbd6   : > { %1428 = vrot.lane.b32.xlu0 %v2731_v19, %s2873_s22  ;;  %v1424_v3 = vmul.f32 0.5, %v2731_v19 }
 0xbd8   : > { %v1425_v1 = vadd.f32 0.5, %v1424_v3  ;;  %v3811_v3 = vmov %v3807_v57 }
 0xbda   : > { %v1426_v62 = vmul.f32 %v1425_v1, %v1326_v7 }
 0xc48   : > { %v1429_v60 = vpop.permute.xlu0 %1428 }
 0xc49   : > { %v1431_v61 = vmul.f32 %v1429_v60, %v1425_v1 }
 0xc4b   : > { %1433 = vrot.lane.b32.xlu1 %v1431_v61, %s2869_s6 }
 0xcbd   : > { %v1434_v32 = vpop.permute.xlu1 %1433 }
 0xcbe   : > { %v1436_v36 = vadd.f32 %v1434_v32, %v1426_v62  }
 0xcc0   : > { %2732 = vtanh.f32 %v1436_v36  ;;  %v3815_v15 = vmov %v1436_v36 }
 0xcca   : > { %v2733_v63 = vpop.eup %2732 }
 0xccb   : > { %1439 = vrot.lane.b32.xlu0 %v2733_v63, %s2873_s22 }
 0xd3d   : > { %v1440_v6 = vpop.permute.xlu0 %1439 }
 0xd3e   : > { %v1442_v17 = vmul.f32 %v1440_v6, %v1425_v1   ;;  %v3812_v1 = vmov %v3805_v10 }
 0xd40   : > { %1450 = vrot.lane.b32.xlu1 %v1442_v17, %s2869_s6  ;;  %v3816_v19 = vmov %v1442_v17 }
 0xdb2   : > { %v1451_v18 = vpop.permute.xlu1 %1450 }
 0xdb3   : > { %2445 = vmatmul.mubr.msk.f32.vlgmr.msra.gmra.mrb[4].mxu0 %vm1015_vm11, %v1451_v18 }
 0xe86   : > { %v1520_v20 = vpop.f32.mrb[4].mxu0 }
 0xe87   : > { %v1521_v35 = vadd.f32 %v3294_v0, %v1520_v20  ;;  %v2446_v31 = vpop.f32.mrb[5].mxu0 }
 0xe89   : > { %v1524_v14 = vmax.f32 %v1521_v35, 0.0 }
 0xe8b   : > { %v1531_v59 = vmul.f32 %v3299_v24, %v1524_v14 }
 0xe8d   : > { %v1532_v37 = vsel %vm1015_vm11, %v1531_v59, 0.0 }
 0xe8e   : > { %1533 = vadd.xlane.f32.xlu0 %v1532_v37 }
 0xf1b   : > { %v1534_v27 = vpop.xlane.xlu0 %1533 }
 0xf1c   : > { %v1536_v39 = vadd.f32 %v1535_v38, %v1534_v27 }
 0xf1e   : > { %1538 = vst.msk [vmem:[%s983_s26] sm:$0xff] %vm1537_vm12, %v1536_v39 }
 0xf25   : > { %v1539_v40 = vld [vmem:[%s983_s26] sm:$0xff] }
 0xf26   : > { %1541 = vrot.lane.b32.xlu1 %v1539_v40, %s2874_s29 }
 0xf98   : > { %v1542_v9 = vpop.permute.xlu1 %1541 }
 0xf99   : > { %v1544_v42 = vsel %vm899_vm8, %v1542_v9, 0.0 }
 0xf9a   : > { %1545 = vadd.xlane.f32.xlu1 %v1544_v42 }
0x1027   : > { %v1546_v4 = vpop.xlane.xlu1 %1545 }
0x1028   : > { %v1547_v43 = vadd.f32 %v1546_v4, %v1536_v39  ;;  %974 = sbr.rel (!%p972_p0) target bundleno = 583 (0x247), region = 104 }
0x102a   : > { %v1549_v7 = vmul.f32 %v1548_v5, %v1547_v43 }
0x102c   : > { %v1550_v44 = vadd.f32 %v1549_v7, %v1337_v53  }
0x102e   : > { %v3814_v4 = vmov %v1550_v44 }
0x102f LB: > { %v3817_v33 = vmov %v2838_v57  ;;  %v3818_v47 = vmov %v2842_v10  ;;  %v2875_v48 = vmov 0.0|0.0   ;;  %vm2876_vm13 = vmmov 0   ;;  %s2878_s0 = smov 32   ;;  %s2243_s5 = sadd.s32 4294967293, %s2862_s12  ;;  %s2862_s12 = sphi %s3661_s12, %s1556_s12   ;;  %v2858_v17 = vphi %v1442_v17, %v1996_v17   ;;  %v2854_v36 = vphi %v1436_v36, %v1990_v36   ;;  %v2850_v44 = vphi %v1550_v44, %v3822_v44   ;;  %v2846_v56 = vphi %v3806_v56, %v3821_v56   ;;  %v2842_v10 = vphi %v3805_v10, %v3820_v10   ;;  %v2838_v57 = vphi %v3807_v57, %v3819_v57  }
0x1030   : > { %2532 = vmatprep.subr.bf16.mxu0 %v2875_v48  ;;  %v2877_v49 = vmov 0.0   ;;  %1582 = vrot.lane.b32.xlu0 %v2858_v17, %s2878_s0  ;;  %v2879_v50 = vmov 0   ;;  %s2244_s15 = sshll.u32 %s2243_s5, 3  ;;  %s2880_s16 = smov 64  }
0x1031   : > { %2455 = vmatprep.mubr.msk.f32.mxu0 %vm2876_vm13, %v2877_v49  ;;  %2534 = vmatpush3.bf16.msra.mxu0 %v3808_v58  ;;  %s1578_s7 = scalar_lea.vmem [#allocation2], %s2244_s15  ;;  %s2242_s18 = sshll.u32 %s2862_s12, 3 }
0x1032   : > { %2535 = vmatprep.subr.bf16.mxu0 %v2875_v48  ;;  %2734 = vset.pattern.permute.xlu0 %v2879_v50  ;;  %v1579_v41 = vld [vmem:[%s1578_s7] sm:$0xff]  ;;  %s3717_s19 = scalar_lea.vmem [#allocation2], %s2242_s18  ;;  %s3740_s22 = scalar_lea.vmem %s3796_s14, %s2242_s18 }
0x1033   : > { %2538 = vmatprep.subr.bf16.mxu1 %v2875_v48  ;;  %2466 = vmatprep.mubr.msk.f32.mxu1 %vm2876_vm13, %v2877_v49  ;;  %v2247_v19 = vld [vmem:[%s3717_s19 - $0x10] sm:$0xff]  ;;  %v2250_v27 = vld [vmem:[%s3717_s19 - $0x8] sm:$0xff]  ;;  %1565 = vst.msk [vmem:[%s3740_s22] sm:$0xff] %vm882_vm7, %v2850_v44  ;;  %s2881_s3 = smov 126   ;;  %s1556_s12 = sadd.s32 1, %s2862_s12  }
0x1034   : > { %2540 = vmatpush3.bf16.msra.mxu1 %v3808_v58  ;;  %2735 = vset.pattern.permute.xlu1 %v2879_v50  ;;  %p1553_p1 = scmp.ge.s32.totalorder %s1556_s12, 16  }
0x1035   : > { %2537 = vmatpush3.bf16.msra.mxu0 %v3809_v25  ;;  %1570 = vperm.xlu0 %2734, %v2846_v56  }
0x1036   : > { %2541 = vmatprep.subr.bf16.mxu1 %v2875_v48  ;;  %2544 = vmatprep.subr.bf16.mxu0 %v2875_v48 }
0x1038   : > { %2543 = vmatpush3.bf16.msra.mxu1 %v3809_v25 }
0x1039   : > { %2550 = vmatprep.subr.bf16.mxu1 %v2875_v48 }
0x10a2   : > { %v1583_v51 = vpop.permute.xlu0 %1582 }
0x10a3   : > { %2456 = vmatmul.mubr.msk.f32.vlgmr.msra.gmra.mrb[0].mxu0 %vm1015_vm11, %v1583_v51 }
0x10a4   : > { %2546 = vmatpush3.bf16.msra.mxu0 %v3808_v58  ;;  %2477 = vmatprep.mubr.msk.f32.mxu0 %vm2876_vm13, %v2877_v49 }
0x10a5   : > { %2547 = vmatprep.subr.bf16.mxu0 %v2875_v48 }
0x10a8   : > { %2549 = vmatpush3.bf16.msra.mxu0 %v3809_v25 }
0x10a9   : > { %2556 = vmatprep.subr.bf16.mxu0 %v2875_v48 }
0x10b4   : > { %v1571_v22 = vpop.permute.xlu0 %1570 }
0x10b5   : > { %v1577_v23 = vmul.f32 %v1571_v22, %v3530_v12 }
0x10b7   : > { %v1580_v46 = vadd.f32 %v1579_v41, %v1577_v23 }
0x1176   : > { %v1653_v10 = vpop.f32.mrb[0].mxu0 }
0x1177   : > { %v1657_v56 = vadd.f32 %v1653_v10, %v1580_v46  ;;  %v2457_v57 = vpop.f32.mrb[1].mxu0 }
0x1179   : > { %2736 = vtanh.f32 %v1657_v56 }
0x1183   : > { %v2737_v21 = vpop.eup %2736 }
0x1184   : > { %1663 = vrot.lane.b32.xlu1 %v2737_v21, %s2880_s16  ;;  %v1659_v45 = vmul.f32 0.5, %v2737_v21  ;;  %v1899_v21 = vld [vmem:[%s3717_s19] sm:$0xff] }
0x1186   : > { %v1660_v52 = vadd.f32 0.5, %v1659_v45 }
0x1188   : > { %v1661_v34 = vmul.f32 %v2854_v36, %v1660_v52 }
0x11f6   : > { %v1664_v53 = vpop.permute.xlu1 %1663 }
0x11f7   : > { %v1666_v30 = vmul.f32 %v1664_v53, %v1660_v52 }
0x11f9   : > { %1668 = vrot.lane.b32.xlu1 %v1666_v30, %s2878_s0 }
0x126b   : > { %v1669_v54 = vpop.permute.xlu1 %1668 }
0x126c   : > { %v1671_v55 = vadd.f32 %v1669_v54, %v1661_v34 }
0x126e   : > { %2738 = vtanh.f32 %v1671_v55 }
0x1278   : > { %v2739_v16 = vpop.eup %2738 }
0x1279   : > { %1674 = vrot.lane.b32.xlu1 %v2739_v16, %s2880_s16 }
0x127d   : > { %1682 = vperm.xlu1 %2735, %v3818_v47  }
0x12eb   : > { %v1675_v11 = vpop.permute.xlu1 %1674 }
0x12ec   : > { %v1677_v26 = vmul.f32 %v1675_v11, %v1660_v52 }
0x12ee   : > { %1690 = vrot.lane.b32.xlu0 %v1677_v26, %s2878_s0 }
0x12fc   : > { %v1683_v15 = vpop.permute.xlu1 %1682 }
0x12fd   : > { %v1685_v13 = vmul.f32 %v1683_v15, %v3530_v12 }
0x12ff   : > { %v1688_v3 = vadd.f32 %v2247_v19, %v1685_v13 }
0x1360   : > { %v1691_v28 = vpop.permute.xlu0 %1690 }
0x1361   : > { %2467 = vmatmul.mubr.msk.f32.vlgmr.msra.gmra.mrb[0].mxu1 %vm1015_vm11, %v1691_v28 }
0x1362   : > { %2552 = vmatpush3.bf16.msra.mxu1 %v3808_v58  ;;  %2488 = vmatprep.mubr.msk.f32.mxu1 %vm2876_vm13, %v2877_v49 }
0x1363   : > { %2553 = vmatprep.subr.bf16.mxu1 %v2875_v48 }
0x1366   : > { %2555 = vmatpush3.bf16.msra.mxu1 %v3809_v25 }
0x1434   : > { %v1760_v1 = vpop.f32.mrb[0].mxu1 }
0x1435   : > { %v1764_v60 = vadd.f32 %v1760_v1, %v1688_v3  ;;  %v2468_v61 = vpop.f32.mrb[1].mxu1 }
0x1437   : > { %2740 = vtanh.f32 %v1764_v60 }
0x1441   : > { %v2741_v62 = vpop.eup %2740 }
0x1442   : > { %1770 = vrot.lane.b32.xlu0 %v2741_v62, %s2880_s16  ;;  %v1766_v32 = vmul.f32 0.5, %v2741_v62 }
0x1444   : > { %v1767_v36 = vadd.f32 0.5, %v1766_v32 }
0x1446   : > { %v1768_v6 = vmul.f32 %v1767_v36, %v1671_v55 }
0x14b4   : > { %v1771_v2 = vpop.permute.xlu0 %1770 }
0x14b5   : > { %v1773_v63 = vmul.f32 %v1771_v2, %v1767_v36 }
0x14b7   : > { %1775 = vrot.lane.b32.xlu1 %v1773_v63, %s2878_s0 }
0x1529   : > { %v1776_v17 = vpop.permute.xlu1 %1775 }
0x152a   : > { %v1778_v18 = vadd.f32 %v1776_v17, %v1768_v6 }
0x152c   : > { %2742 = vtanh.f32 %v1778_v18 }
0x1536   : > { %v2743_v20 = vpop.eup %2742 }
0x1537   : > { %1781 = vrot.lane.b32.xlu0 %v2743_v20, %s2880_s16 }
0x153b   : > { %1789 = vperm.xlu0 %2734, %v3817_v33  }
0x15a9   : > { %v1782_v35 = vpop.permute.xlu0 %1781 }
0x15aa   : > { %v1784_v31 = vmul.f32 %v1782_v35, %v1767_v36 }
0x15ac   : > { %1797 = vrot.lane.b32.xlu1 %v1784_v31, %s2878_s0 }
0x15ba   : > { %v1790_v59 = vpop.permute.xlu0 %1789 }
0x15bb   : > { %v1792_v37 = vmul.f32 %v1790_v59, %v3530_v12 }
0x15bd   : > { %v1795_v39 = vadd.f32 %v2250_v27, %v1792_v37 }
0x161e   : > { %v1798_v14 = vpop.permute.xlu1 %1797 }
0x161f   : > { %2478 = vmatmul.mubr.msk.f32.vlgmr.msra.gmra.mrb[2].mxu0 %vm1015_vm11, %v1798_v14 }
0x1620   : > { %2558 = vmatpush3.bf16.msra.mxu0 %v3591_v29  ;;  %2499 = vmatprep.mubr.msk.f32.mxu0 %vm2876_vm13, %v2877_v49 }
0x1621   : > { %2559 = vmatprep.subr.bf16.mxu0 %v2875_v48 }
0x1624   : > { %2561 = vmatpush3.bf16.msra.mxu0 %v3810_v8 }
0x16f2   : > { %v1867_v40 = vpop.f32.mrb[2].mxu0 }
0x16f3   : > { %v1871_v9 = vadd.f32 %v1867_v40, %v1795_v39  ;;  %v2479_v42 = vpop.f32.mrb[3].mxu0 }
0x16f5   : > { %2744 = vtanh.f32 %v1871_v9 }
0x16ff   : > { %v2745_v4 = vpop.eup %2744 }
0x1700   : > { %1877 = vrot.lane.b32.xlu1 %v2745_v4, %s2880_s16  ;;  %v1873_v43 = vmul.f32 0.5, %v2745_v4 }
0x1702   : > { %v1874_v7 = vadd.f32 0.5, %v1873_v43 }
0x1704   : > { %v1875_v48 = vmul.f32 %v1874_v7, %v1778_v18 }
0x1772   : > { %v1878_v49 = vpop.permute.xlu1 %1877 }
0x1773   : > { %v1880_v50 = vmul.f32 %v1878_v49, %v1874_v7 }
0x1775   : > { %1882 = vrot.lane.b32.xlu0 %v1880_v50, %s2878_s0 }
0x17e7   : > { %v1883_v51 = vpop.permute.xlu0 %1882 }
0x17e8   : > { %v1885_v22 = vadd.f32 %v1883_v51, %v1875_v48 }
0x17ea   : > { %2746 = vtanh.f32 %v1885_v22 }
0x17f4   : > { %v2747_v23 = vpop.eup %2746 }
0x17f5   : > { %1888 = vrot.lane.b32.xlu1 %v2747_v23, %s2880_s16 }
0x17f9   : > { %1894 = vperm.xlu1 %2735, %v2850_v44  }
0x1867   : > { %v1889_v41 = vpop.permute.xlu1 %1888 }
0x1868   : > { %v1891_v46 = vmul.f32 %v1889_v41, %v1874_v7 }
0x186a   : > { %1902 = vrot.lane.b32.xlu0 %v1891_v46, %s2878_s0 }
0x1878   : > { %v1895_v56 = vpop.permute.xlu1 %1894 }
0x1879   : > { %v1897_v57 = vmul.f32 %v1895_v56, %v3530_v12  ;;  %v3821_v56 = vmov %v3818_v47 }
0x187b   : > { %v1900_v45 = vadd.f32 %v1899_v21, %v1897_v57  ;;  %v3819_v57 = vmov %v2850_v44 }
0x18dc   : > { %v1903_v10 = vpop.permute.xlu0 %1902 }
0x18dd   : > { %2489 = vmatmul.mubr.msk.f32.vlgmr.msra.gmra.mrb[2].mxu1 %vm1015_vm11, %v1903_v10  ;;  %v3820_v10 = vmov %v3817_v33 }
0x19b0   : > { %v1972_v52 = vpop.f32.mrb[2].mxu1 }
0x19b1   : > { %v1976_v53 = vadd.f32 %v1972_v52, %v1900_v45  ;;  %v2490_v30 = vpop.f32.mrb[3].mxu1 }
0x19b3   : > { %2748 = vtanh.f32 %v1976_v53 }
0x19bd   : > { %v2749_v34 = vpop.eup %2748 }
0x19be   : > { %1982 = vrot.lane.b32.xlu0 %v2749_v34, %s2880_s16  ;;  %v1978_v54 = vmul.f32 0.5, %v2749_v34 }
0x19c0   : > { %v1979_v55 = vadd.f32 0.5, %v1978_v54 }
0x19c2   : > { %v1980_v26 = vmul.f32 %v1979_v55, %v1885_v22 }
0x1a30   : > { %v1983_v16 = vpop.permute.xlu0 %1982 }
0x1a31   : > { %v1985_v11 = vmul.f32 %v1983_v16, %v1979_v55 }
0x1a33   : > { %1987 = vrot.lane.b32.xlu1 %v1985_v11, %s2878_s0 }
0x1aa5   : > { %v1988_v28 = vpop.permute.xlu1 %1987 }
0x1aa6   : > { %v1990_v36 = vadd.f32 %v1988_v28, %v1980_v26  }
0x1aa8   : > { %2750 = vtanh.f32 %v1990_v36 }
0x1ab2   : > { %v2751_v15 = vpop.eup %2750 }
0x1ab3   : > { %1993 = vrot.lane.b32.xlu0 %v2751_v15, %s2880_s16 }
0x1b25   : > { %v1994_v13 = vpop.permute.xlu0 %1993 }
0x1b26   : > { %v1996_v17 = vmul.f32 %v1994_v13, %v1979_v55  }
0x1b28   : > { %2004 = vrot.lane.b32.xlu1 %v1996_v17, %s2878_s0 }
0x1b9a   : > { %v2005_v19 = vpop.permute.xlu1 %2004 }
0x1b9b   : > { %2500 = vmatmul.mubr.msk.f32.vlgmr.msra.gmra.mrb[4].mxu0 %vm1015_vm11, %v2005_v19 }
0x1c6e   : > { %v2074_v3 = vpop.f32.mrb[4].mxu0 }
0x1c6f   : > { %v2075_v1 = vadd.f32 %v3294_v0, %v2074_v3  ;;  %v2501_v60 = vpop.f32.mrb[5].mxu0 }
0x1c71   : > { %v2078_v61 = vmax.f32 %v2075_v1, 0.0 }
0x1c73   : > { %v2085_v62 = vmul.f32 %v3299_v24, %v2078_v61 }
0x1c75   : > { %v2086_v32 = vsel %vm1015_vm11, %v2085_v62, 0.0 }
0x1c76   : > { %2087 = vadd.xlane.f32.xlu0 %v2086_v32 }
0x1d03   : > { %v2088_v2 = vpop.xlane.xlu0 %2087 }
0x1d04   : > { %v2090_v63 = vadd.f32 %v2088_v2, %v1535_v38 }
0x1d06   : > { %2092 = vst.msk [vmem:[%s3740_s22] sm:$0xff] %vm1537_vm12, %v2090_v63 }
0x1d0d   : > { %v2093_v6 = vld [vmem:[%s3740_s22] sm:$0xff] }
0x1d0e   : > { %2095 = vrot.lane.b32.xlu1 %v2093_v6, %s2881_s3 }
0x1d80   : > { %v2096_v18 = vpop.permute.xlu1 %2095 }
0x1d81   : > { %v2098_v20 = vsel %vm899_vm8, %v2096_v18, 0.0 }
0x1d82   : > { %2099 = vadd.xlane.f32.xlu1 %v2098_v20 }
0x1e0f   : > { %v2100_v35 = vpop.xlane.xlu1 %2099 }
0x1e10   : > { %v2101_v31 = vadd.f32 %v2100_v35, %v2090_v63  ;;  %1555 = sbr.rel (!%p1553_p1) target bundleno = 4143 (0x102f), region = 115 }
0x1e12   : > { %v2103_v14 = vmul.f32 %v2101_v31, %v1548_v5 }
0x1e14   : > { %v2104_v59 = vadd.f32 %v2850_v44, %v2103_v14  }
0x1e16   : > { %v3822_v44 = vmov %v2104_v59 }

</bundles_post_ra>
